<compile_context>
chip_gen: v6e
topology: v6e:2x2x1
jax: 0.10.0
libtpu: 0.0.40
codegen_flags: <defaults>
</compile_context>

<pallas_src>
import math

import jax
import jax.numpy as jnp
from jax import lax
from jax.experimental import pallas as pl
from jax.experimental.pallas import tpu as pltpu

# ----- small config ---------------------------------------------------------
B = 2
HIDDEN = 32                  # hidden_size
NH = 4                       # num_attention_heads
HD = HIDDEN // NH            # attention_head_size
S = HIDDEN                   # seq_len (must equal hidden_size, see note above)
NK = NH * S                  # number of keys after per-head memory concat
LN_EPS = 1e-12
SCALE = 1.0 / math.sqrt(HD)


# ----- Pallas kernel --------------------------------------------------------
def _bert_attention_kernel(x_ref, wq_ref, wk_ref, wv_ref, memk_ref, memv_ref,
                           mask_ref, vec_ref, wo_ref, out_ref):
    f32, bf16 = jnp.float32, jnp.bfloat16

    x = x_ref[...]                                           # [B*S, H] (f32, kept for residual/LN)
    vec = vec_ref[...]                                       # [8, H] packed small vectors
    bq, bk, bv = vec[0:1], vec[1:2], vec[2:3]
    bo, lnw, lnb = vec[3:4], vec[4:5], vec[5:6]
    gate = jax.nn.sigmoid(vec[6:7, 0:NH])                    # [1, NH]

    # bf16 operands for every MXU dot; accumulation stays f32.
    xb = x.astype(bf16)
    wq = wq_ref[...].astype(bf16)
    wk = wk_ref[...].astype(bf16)
    wv = wv_ref[...].astype(bf16)
    wo = wo_ref[...].astype(bf16)
    memk = memk_ref[...].astype(bf16)                        # [NH*H, H]
    memv = memv_ref[...].astype(bf16)

    def mm(a, b):
        return jnp.dot(a, b, preferred_element_type=f32)

    # Fused Q/K/V projections over all B*S rows (one [64,32]x[32,32] dot each).
    q = mm(xb, wq) + bq                                      # [B*S, H] f32
    k = mm(xb, wk) + bk
    v = mm(xb, wv) + bv

    attn_rows = []
    for b in range(B):                                       # static unroll, B=2
        q_b = q[b * S:(b + 1) * S]                           # [S, H]
        k_b = k[b * S:(b + 1) * S]
        v_b = v[b * S:(b + 1) * S]

        # Fused per-head "infini" memory projection: one [NH*H,H]x[H,H] dot each;
        # head h's block is memory_keys[h] @ key_layer[:, h].
        k_all = mm(memk, k_b.astype(bf16))                   # [NH*H, H]
        v_all = mm(memv, v_b.astype(bf16))

        k_comb = jnp.concatenate(
            [k_all[h * S:(h + 1) * S, h * HD:(h + 1) * HD] for h in range(NH)],
            axis=0)                                          # [NK, HD]
        v_comb = jnp.concatenate(
            [v_all[h * S:(h + 1) * S, h * HD:(h + 1) * HD] for h in range(NH)],
            axis=0)                                          # [NK, HD]
        q_stk = jnp.concatenate(
            [q_b[:, h * HD:(h + 1) * HD] for h in range(NH)],
            axis=0)                                          # [NH*S, HD]

        # One stacked-head score dot + one softmax + one context dot.
        scores = lax.dot_general(
            q_stk.astype(bf16), k_comb,
            (((1,), (1,)), ((), ())),
            preferred_element_type=f32) * SCALE              # [NH*S, NK]
        scores = scores + mask_ref[b:b + 1]                  # broadcast [1, NK]
        scores = scores - jnp.max(scores, axis=-1, keepdims=True)
        p = jnp.exp(scores)
        p = p * pl.reciprocal(jnp.sum(p, axis=-1, keepdims=True), approx=True)
        # TODO(synk): attention_probs dropout is an eval-mode identity here.
        ctx = mm(p.astype(bf16), v_comb)                     # [NH*S, HD]

        # Head merge + per-head gate folded into the output projection:
        #   out = sum_h (gate_h * ctx_h) @ Wo[h*HD:(h+1)*HD, :]
        # TODO(synk): retrieve_from_memory() is `pass` in the reference; its
        # (1 - gate) * memory term is treated as a zero contribution.
        out_b = mm((ctx[0:S] * gate[0:1, 0:1]).astype(bf16), wo[0:HD])
        for h in range(1, NH):
            out_b = out_b + mm(
                (ctx[h * S:(h + 1) * S] * gate[0:1, h:h + 1]).astype(bf16),
                wo[h * HD:(h + 1) * HD])
        attn_rows.append(out_b)                              # [S, H]

    attn = jnp.concatenate(attn_rows, axis=0)                # [B*S, H]

    # BertSelfOutput: dense (above) -> +bias -> residual -> LayerNorm (all f32).
    h_res = attn + bo + x
    mu = jnp.mean(h_res, axis=-1, keepdims=True)
    var = jnp.mean(jnp.square(h_res - mu), axis=-1, keepdims=True)
    normed = (h_res - mu) * lax.rsqrt(var + LN_EPS)
    out_ref[...] = normed * lnw + lnb


def _full_spec(shape):
    nd = len(shape)
    return pl.BlockSpec(shape, lambda *_: (0,) * nd)


def bert_attention(x, params, attention_mask):
    # Wrapper-side layout plumbing (free XLA reshapes): flatten batch, flatten
    # per-head memory matrices, and pack the seven tiny vectors into one slab.
    x2 = x.reshape(B * S, HIDDEN)
    memk_flat = params["mem_k"].reshape(NH * HIDDEN, HIDDEN)
    memv_flat = params["mem_v"].reshape(NH * HIDDEN, HIDDEN)
    mask2d = attention_mask.reshape(B, NK)
    gate_row = jnp.zeros((1, HIDDEN), jnp.float32).at[0, :NH].set(params["gate"][0])
    vecs = jnp.concatenate(
        [params["bq"], params["bk"], params["bv"], params["bo"],
         params["ln_w"], params["ln_b"], gate_row,
         jnp.zeros((1, HIDDEN), jnp.float32)], axis=0)       # [8, H]

    in_specs = [
        _full_spec((B * S, HIDDEN)),                         # x (flattened)
        _full_spec((HIDDEN, HIDDEN)),                        # wq_t
        _full_spec((HIDDEN, HIDDEN)),                        # wk_t
        _full_spec((HIDDEN, HIDDEN)),                        # wv_t
        _full_spec((NH * HIDDEN, HIDDEN)),                   # memory_keys (stacked)
        _full_spec((NH * HIDDEN, HIDDEN)),                   # memory_values (stacked)
        _full_spec((B, NK)),                                 # additive attention mask
        _full_spec((8, HIDDEN)),                             # packed bq/bk/bv/bo/ln_w/ln_b/gate
        _full_spec((HIDDEN, HIDDEN)),                        # wo_t
    ]
    out_spec = _full_spec((B * S, HIDDEN))

    out = pl.pallas_call(
        _bert_attention_kernel,
        out_shape=jax.ShapeDtypeStruct((B * S, HIDDEN), jnp.float32),
        grid_spec=pltpu.PrefetchScalarGridSpec(
            num_scalar_prefetch=0,
            grid=(1,),                                       # single invocation
            in_specs=in_specs,
            out_specs=out_spec),
        compiler_params=pltpu.CompilerParams(
            dimension_semantics=("arbitrary",)),
    )(x2, params["wq"], params["wk"], params["wv"],
      memk_flat, memv_flat, mask2d, vecs, params["wo"])
    return out.reshape(B, S, HIDDEN)


# ----- pure-JAX reference (same intended semantics, f32) --------------------
def bert_attention_ref(x, p, attention_mask):
    with jax.default_matmul_precision("float32"):
        q = x @ p["wq"] + p["bq"][0]
        k = x @ p["wk"] + p["bk"][0]
        v = x @ p["wv"] + p["bv"][0]

        def split_heads(t):
            return t.reshape(B, S, NH, HD).transpose(0, 2, 1, 3)   # [B,NH,S,hd]

        qh, kh, vh = split_heads(q), split_heads(k), split_heads(v)
        k_comb = jnp.concatenate(
            [jnp.einsum("pq,bqd->bpd", p["mem_k"][i], kh[:, i]) for i in range(NH)], axis=1)
        v_comb = jnp.concatenate(
            [jnp.einsum("pq,bqd->bpd", p["mem_v"][i], vh[:, i]) for i in range(NH)], axis=1)
        scores = jnp.einsum("bhsd,bkd->bhsk", qh, k_comb) * SCALE
        scores = scores + attention_mask[:, :, None, :]            # [B,1,1,NK]
        probs = jax.nn.softmax(scores, axis=-1)
        ctx = jnp.einsum("bhsk,bkd->bhsd", probs, v_comb)          # [B,NH,S,hd]
        gate = jax.nn.sigmoid(p["gate"])[0]                        # [NH]
        ctx = gate[None, :, None, None] * ctx                      # per-head gate; memory term = 0
        ctx = ctx.transpose(0, 2, 1, 3).reshape(B, S, HIDDEN)
        out = ctx @ p["wo"] + p["bo"][0]
        h_res = out + x
        mu = h_res.mean(-1, keepdims=True)
        var = ((h_res - mu) ** 2).mean(-1, keepdims=True)
        return (h_res - mu) / jnp.sqrt(var + LN_EPS) * p["ln_w"][0] + p["ln_b"][0]


# ----- main ------------------------------------------------------------------
if __name__ == "__main__":
    key = jax.random.PRNGKey(0)
    ks = jax.random.split(key, 20)

    def init(k, shape, scale=0.02):
        return (scale * jax.random.normal(k, shape)).astype(jnp.float32)

    x = jax.random.normal(ks[0], (B, S, HIDDEN), dtype=jnp.float32)
    params = {
        "wq": init(ks[1], (HIDDEN, HIDDEN)),
        "wk": init(ks[2], (HIDDEN, HIDDEN)),
        "wv": init(ks[3], (HIDDEN, HIDDEN)),
        "bq": init(ks[4], (1, HIDDEN)),
        "bk": init(ks[5], (1, HIDDEN)),
        "bv": init(ks[6], (1, HIDDEN)),
        "mem_k": init(ks[7], (NH, HIDDEN, HIDDEN)),
        "mem_v": init(ks[8], (NH, HIDDEN, HIDDEN)),
        "gate": init(ks[9], (1, NH), scale=1.0),
        "wo": init(ks[10], (HIDDEN, HIDDEN)),
        "bo": init(ks[11], (1, HIDDEN)),
        "ln_w": (1.0 + init(ks[12], (1, HIDDEN))).astype(jnp.float32),
        "ln_b": init(ks[13], (1, HIDDEN)),
    }
    # additive attention mask over the NH*S concatenated keys: 0 = attend, -1e9 = masked
    key_valid = jnp.arange(NK) < (NK - 16)
    attention_mask = jnp.broadcast_to(
        jnp.where(key_valid, 0.0, -1e9).astype(jnp.float32)[None, None, :], (B, 1, NK))
    attention_mask = jnp.asarray(attention_mask)

    out = bert_attention(x, params, attention_mask)
    out = jax.block_until_ready(out)

    ref = bert_attention_ref(x, params, attention_mask)
    assert out.shape == (B, S, HIDDEN)
    assert jnp.allclose(out, ref, atol=1e-2, rtol=1e-2), float(jnp.max(jnp.abs(out - ref)))

    print("KERNEL_OK")
</pallas_src>

<mosaic_0001>
module attributes {stable_mosaic.version = 11 : i64} {
  func.func @_bert_attention_kernel(%arg0: i32, %arg1: memref<64x32xf32, #tpu.memory_space<vmem>>, %arg2: memref<32x32xf32, #tpu.memory_space<vmem>>, %arg3: memref<32x32xf32, #tpu.memory_space<vmem>>, %arg4: memref<32x32xf32, #tpu.memory_space<vmem>>, %arg5: memref<128x32xf32, #tpu.memory_space<vmem>>, %arg6: memref<128x32xf32, #tpu.memory_space<vmem>>, %arg7: memref<2x128xf32, #tpu.memory_space<vmem>>, %arg8: memref<8x32xf32, #tpu.memory_space<vmem>>, %arg9: memref<32x32xf32, #tpu.memory_space<vmem>>, %arg10: memref<64x32xf32, #tpu.memory_space<vmem>>) attributes {dimension_semantics = [#tpu.dimension_semantics<arbitrary>], iteration_bounds = array<i64: 1>, scalar_prefetch = 0 : i64, scratch_operands = 0 : i64, tpu.core_type = #tpu.core_type<tc>, window_params = [{pipeline_mode = #tpu.pipeline_mode<synchronous>, transform_indices = @transform_0, window_bounds = array<i64: 64, 32>}, {pipeline_mode = #tpu.pipeline_mode<synchronous>, transform_indices = @transform_1, window_bounds = array<i64: 32, 32>}, {pipeline_mode = #tpu.pipeline_mode<synchronous>, transform_indices = @transform_2, window_bounds = array<i64: 32, 32>}, {pipeline_mode = #tpu.pipeline_mode<synchronous>, transform_indices = @transform_3, window_bounds = array<i64: 32, 32>}, {pipeline_mode = #tpu.pipeline_mode<synchronous>, transform_indices = @transform_4, window_bounds = array<i64: 128, 32>}, {pipeline_mode = #tpu.pipeline_mode<synchronous>, transform_indices = @transform_5, window_bounds = array<i64: 128, 32>}, {pipeline_mode = #tpu.pipeline_mode<synchronous>, transform_indices = @transform_6, window_bounds = array<i64: 2, 128>}, {pipeline_mode = #tpu.pipeline_mode<synchronous>, transform_indices = @transform_7, window_bounds = array<i64: 8, 32>}, {pipeline_mode = #tpu.pipeline_mode<synchronous>, transform_indices = @transform_8, window_bounds = array<i64: 32, 32>}, {pipeline_mode = #tpu.pipeline_mode<synchronous>, transform_indices = @transform_9, window_bounds = array<i64: 64, 32>}]} {
    %c0 = arith.constant 0 : index
    %c0_0 = arith.constant 0 : index
    %0 = vector.load %arg1[%c0, %c0_0] : memref<64x32xf32, #tpu.memory_space<vmem>>, vector<64x32xf32>
    %c0_1 = arith.constant 0 : index
    %c0_2 = arith.constant 0 : index
    %1 = vector.load %arg8[%c0_1, %c0_2] : memref<8x32xf32, #tpu.memory_space<vmem>>, vector<8x32xf32>
    %2 = vector.extract_strided_slice %1 {offsets = [0, 0], sizes = [1, 32], strides = [1, 1]} : vector<8x32xf32> to vector<1x32xf32>
    %3 = vector.extract_strided_slice %1 {offsets = [1, 0], sizes = [1, 32], strides = [1, 1]} : vector<8x32xf32> to vector<1x32xf32>
    %4 = vector.extract_strided_slice %1 {offsets = [2, 0], sizes = [1, 32], strides = [1, 1]} : vector<8x32xf32> to vector<1x32xf32>
    %5 = vector.extract_strided_slice %1 {offsets = [3, 0], sizes = [1, 32], strides = [1, 1]} : vector<8x32xf32> to vector<1x32xf32>
    %6 = vector.extract_strided_slice %1 {offsets = [4, 0], sizes = [1, 32], strides = [1, 1]} : vector<8x32xf32> to vector<1x32xf32>
    %7 = vector.extract_strided_slice %1 {offsets = [5, 0], sizes = [1, 32], strides = [1, 1]} : vector<8x32xf32> to vector<1x32xf32>
    %8 = vector.extract_strided_slice %1 {offsets = [6, 0], sizes = [1, 4], strides = [1, 1]} : vector<8x32xf32> to vector<1x4xf32>
    %9 = arith.negf %8 : vector<1x4xf32>
    %10 = math.exp %9 : vector<1x4xf32>
    %cst = arith.constant 1.000000e+00 : f32
    %11 = vector.broadcast %cst : f32 to vector<1x4xf32>
    %12 = arith.addf %11, %10 : vector<1x4xf32>
    %13 = arith.divf %11, %12 : vector<1x4xf32>
    %14 = arith.truncf %0 : vector<64x32xf32> to vector<64x32xbf16>
    %c0_3 = arith.constant 0 : index
    %c0_4 = arith.constant 0 : index
    %15 = vector.load %arg2[%c0_3, %c0_4] : memref<32x32xf32, #tpu.memory_space<vmem>>, vector<32x32xf32>
    %16 = arith.truncf %15 : vector<32x32xf32> to vector<32x32xbf16>
    %c0_5 = arith.constant 0 : index
    %c0_6 = arith.constant 0 : index
    %17 = vector.load %arg3[%c0_5, %c0_6] : memref<32x32xf32, #tpu.memory_space<vmem>>, vector<32x32xf32>
    %18 = arith.truncf %17 : vector<32x32xf32> to vector<32x32xbf16>
    %c0_7 = arith.constant 0 : index
    %c0_8 = arith.constant 0 : index
    %19 = vector.load %arg4[%c0_7, %c0_8] : memref<32x32xf32, #tpu.memory_space<vmem>>, vector<32x32xf32>
    %20 = arith.truncf %19 : vector<32x32xf32> to vector<32x32xbf16>
    %c0_9 = arith.constant 0 : index
    %c0_10 = arith.constant 0 : index
    %21 = vector.load %arg9[%c0_9, %c0_10] : memref<32x32xf32, #tpu.memory_space<vmem>>, vector<32x32xf32>
    %22 = arith.truncf %21 : vector<32x32xf32> to vector<32x32xbf16>
    %c0_11 = arith.constant 0 : index
    %c0_12 = arith.constant 0 : index
    %23 = vector.load %arg5[%c0_11, %c0_12] : memref<128x32xf32, #tpu.memory_space<vmem>>, vector<128x32xf32>
    %24 = arith.truncf %23 : vector<128x32xf32> to vector<128x32xbf16>
    %c0_13 = arith.constant 0 : index
    %c0_14 = arith.constant 0 : index
    %25 = vector.load %arg6[%c0_13, %c0_14] : memref<128x32xf32, #tpu.memory_space<vmem>>, vector<128x32xf32>
    %26 = arith.truncf %25 : vector<128x32xf32> to vector<128x32xbf16>
    %cst_15 = arith.constant dense<0.000000e+00> : vector<64x32xf32>
    %27 = tpu.matmul %14, %16, %cst_15 {dimension_numbers = #tpu.dot_dimension_numbers<[1], [0], [0], [1], [0, 0, 1, 1], [], []>} : vector<64x32xbf16>, vector<32x32xbf16>, vector<64x32xf32> -> vector<64x32xf32>
    %28 = vector.broadcast %2 : vector<1x32xf32> to vector<64x32xf32>
    %29 = arith.addf %27, %28 : vector<64x32xf32>
    %cst_16 = arith.constant dense<0.000000e+00> : vector<64x32xf32>
    %30 = tpu.matmul %14, %18, %cst_16 {dimension_numbers = #tpu.dot_dimension_numbers<[1], [0], [0], [1], [0, 0, 1, 1], [], []>} : vector<64x32xbf16>, vector<32x32xbf16>, vector<64x32xf32> -> vector<64x32xf32>
    %31 = vector.broadcast %3 : vector<1x32xf32> to vector<64x32xf32>
    %32 = arith.addf %30, %31 : vector<64x32xf32>
    %cst_17 = arith.constant dense<0.000000e+00> : vector<64x32xf32>
    %33 = tpu.matmul %14, %20, %cst_17 {dimension_numbers = #tpu.dot_dimension_numbers<[1], [0], [0], [1], [0, 0, 1, 1], [], []>} : vector<64x32xbf16>, vector<32x32xbf16>, vector<64x32xf32> -> vector<64x32xf32>
    %34 = vector.broadcast %4 : vector<1x32xf32> to vector<64x32xf32>
    %35 = arith.addf %33, %34 : vector<64x32xf32>
    %36 = vector.extract_strided_slice %29 {offsets = [0, 0], sizes = [32, 32], strides = [1, 1]} : vector<64x32xf32> to vector<32x32xf32>
    %37 = vector.extract_strided_slice %32 {offsets = [0, 0], sizes = [32, 32], strides = [1, 1]} : vector<64x32xf32> to vector<32x32xf32>
    %38 = vector.extract_strided_slice %35 {offsets = [0, 0], sizes = [32, 32], strides = [1, 1]} : vector<64x32xf32> to vector<32x32xf32>
    %39 = arith.truncf %37 : vector<32x32xf32> to vector<32x32xbf16>
    %cst_18 = arith.constant dense<0.000000e+00> : vector<128x32xf32>
    %40 = tpu.matmul %24, %39, %cst_18 {dimension_numbers = #tpu.dot_dimension_numbers<[1], [0], [0], [1], [0, 0, 1, 1], [], []>} : vector<128x32xbf16>, vector<32x32xbf16>, vector<128x32xf32> -> vector<128x32xf32>
    %41 = arith.truncf %38 : vector<32x32xf32> to vector<32x32xbf16>
    %cst_19 = arith.constant dense<0.000000e+00> : vector<128x32xf32>
    %42 = tpu.matmul %26, %41, %cst_19 {dimension_numbers = #tpu.dot_dimension_numbers<[1], [0], [0], [1], [0, 0, 1, 1], [], []>} : vector<128x32xbf16>, vector<32x32xbf16>, vector<128x32xf32> -> vector<128x32xf32>
    %43 = vector.extract_strided_slice %40 {offsets = [0, 0], sizes = [32, 8], strides = [1, 1]} : vector<128x32xf32> to vector<32x8xf32>
    %44 = vector.extract_strided_slice %40 {offsets = [32, 8], sizes = [32, 8], strides = [1, 1]} : vector<128x32xf32> to vector<32x8xf32>
    %45 = vector.extract_strided_slice %40 {offsets = [64, 16], sizes = [32, 8], strides = [1, 1]} : vector<128x32xf32> to vector<32x8xf32>
    %46 = vector.extract_strided_slice %40 {offsets = [96, 24], sizes = [32, 8], strides = [1, 1]} : vector<128x32xf32> to vector<32x8xf32>
    %47 = tpu.concatenate %43, %44, %45, %46 in 0 : vector<32x8xf32>, vector<32x8xf32>, vector<32x8xf32>, vector<32x8xf32> -> vector<128x8xf32>
    %48 = vector.extract_strided_slice %42 {offsets = [0, 0], sizes = [32, 8], strides = [1, 1]} : vector<128x32xf32> to vector<32x8xf32>
    %49 = vector.extract_strided_slice %42 {offsets = [32, 8], sizes = [32, 8], strides = [1, 1]} : vector<128x32xf32> to vector<32x8xf32>
    %50 = vector.extract_strided_slice %42 {offsets = [64, 16], sizes = [32, 8], strides = [1, 1]} : vector<128x32xf32> to vector<32x8xf32>
    %51 = vector.extract_strided_slice %42 {offsets = [96, 24], sizes = [32, 8], strides = [1, 1]} : vector<128x32xf32> to vector<32x8xf32>
    %52 = tpu.concatenate %48, %49, %50, %51 in 0 : vector<32x8xf32>, vector<32x8xf32>, vector<32x8xf32>, vector<32x8xf32> -> vector<128x8xf32>
    %53 = vector.extract_strided_slice %36 {offsets = [0, 0], sizes = [32, 8], strides = [1, 1]} : vector<32x32xf32> to vector<32x8xf32>
    %54 = vector.extract_strided_slice %36 {offsets = [0, 8], sizes = [32, 8], strides = [1, 1]} : vector<32x32xf32> to vector<32x8xf32>
    %55 = vector.extract_strided_slice %36 {offsets = [0, 16], sizes = [32, 8], strides = [1, 1]} : vector<32x32xf32> to vector<32x8xf32>
    %56 = vector.extract_strided_slice %36 {offsets = [0, 24], sizes = [32, 8], strides = [1, 1]} : vector<32x32xf32> to vector<32x8xf32>
    %57 = tpu.concatenate %53, %54, %55, %56 in 0 : vector<32x8xf32>, vector<32x8xf32>, vector<32x8xf32>, vector<32x8xf32> -> vector<128x8xf32>
    %58 = arith.truncf %57 : vector<128x8xf32> to vector<128x8xbf16>
    %cst_20 = arith.constant dense<0.000000e+00> : vector<128x128xf32>
    %59 = tpu.matmul %58, %47, %cst_20 {dimension_numbers = #tpu.dot_dimension_numbers<[1], [1], [0], [0], [0, 0, 1, 0], [], []>} : vector<128x8xbf16>, vector<128x8xf32>, vector<128x128xf32> -> vector<128x128xf32>
    %cst_21 = arith.constant 0.353553385 : f32
    %60 = vector.broadcast %cst_21 : f32 to vector<128x128xf32>
    %61 = arith.mulf %59, %60 : vector<128x128xf32>
    %c0_22 = arith.constant 0 : index
    %c0_23 = arith.constant 0 : index
    %62 = vector.load %arg7[%c0_22, %c0_23] : memref<2x128xf32, #tpu.memory_space<vmem>>, vector<1x128xf32>
    %63 = vector.broadcast %62 : vector<1x128xf32> to vector<128x128xf32>
    %64 = arith.addf %61, %63 : vector<128x128xf32>
    %cst_24 = arith.constant dense<0xFF800000> : vector<128xf32>
    %65 = vector.multi_reduction <maximumf>, %64, %cst_24 [1] : vector<128x128xf32> to vector<128xf32>
    %66 = vector.shape_cast %65 : vector<128xf32> to vector<128x1xf32>
    %67 = vector.broadcast %66 : vector<128x1xf32> to vector<128x128xf32>
    %68 = arith.subf %64, %67 : vector<128x128xf32>
    %69 = math.exp %68 : vector<128x128xf32>
    %cst_25 = arith.constant dense<0.000000e+00> : vector<128xf32>
    %70 = vector.multi_reduction <add>, %69, %cst_25 [1] : vector<128x128xf32> to vector<128xf32>
    %71 = vector.shape_cast %70 : vector<128xf32> to vector<128x1xf32>
    %72 = tpu.reciprocal %71 {approx = true} : vector<128x1xf32> -> vector<128x1xf32>
    %73 = vector.broadcast %72 : vector<128x1xf32> to vector<128x128xf32>
    %74 = arith.mulf %69, %73 : vector<128x128xf32>
    %75 = arith.truncf %74 : vector<128x128xf32> to vector<128x128xbf16>
    %cst_26 = arith.constant dense<0.000000e+00> : vector<128x8xf32>
    %76 = tpu.matmul %75, %52, %cst_26 {dimension_numbers = #tpu.dot_dimension_numbers<[1], [0], [0], [1], [0, 0, 1, 1], [], []>} : vector<128x128xbf16>, vector<128x8xf32>, vector<128x8xf32> -> vector<128x8xf32>
    %77 = vector.extract_strided_slice %76 {offsets = [0, 0], sizes = [32, 8], strides = [1, 1]} : vector<128x8xf32> to vector<32x8xf32>
    %78 = vector.extract_strided_slice %13 {offsets = [0, 0], sizes = [1, 1], strides = [1, 1]} : vector<1x4xf32> to vector<1x1xf32>
    %79 = vector.broadcast %78 : vector<1x1xf32> to vector<32x8xf32>
    %80 = arith.mulf %77, %79 : vector<32x8xf32>
    %81 = arith.truncf %80 : vector<32x8xf32> to vector<32x8xbf16>
    %82 = vector.extract_strided_slice %22 {offsets = [0, 0], sizes = [8, 32], strides = [1, 1]} : vector<32x32xbf16> to vector<8x32xbf16>
    %cst_27 = arith.constant dense<0.000000e+00> : vector<32x32xf32>
    %83 = tpu.matmul %81, %82, %cst_27 {dimension_numbers = #tpu.dot_dimension_numbers<[1], [0], [0], [1], [0, 0, 1, 1], [], []>} : vector<32x8xbf16>, vector<8x32xbf16>, vector<32x32xf32> -> vector<32x32xf32>
    %84 = vector.extract_strided_slice %76 {offsets = [32, 0], sizes = [32, 8], strides = [1, 1]} : vector<128x8xf32> to vector<32x8xf32>
    %85 = vector.extract_strided_slice %13 {offsets = [0, 1], sizes = [1, 1], strides = [1, 1]} : vector<1x4xf32> to vector<1x1xf32>
    %86 = vector.broadcast %85 : vector<1x1xf32> to vector<32x8xf32>
    %87 = arith.mulf %84, %86 : vector<32x8xf32>
    %88 = arith.truncf %87 : vector<32x8xf32> to vector<32x8xbf16>
    %89 = vector.extract_strided_slice %22 {offsets = [8, 0], sizes = [8, 32], strides = [1, 1]} : vector<32x32xbf16> to vector<8x32xbf16>
    %cst_28 = arith.constant dense<0.000000e+00> : vector<32x32xf32>
    %90 = tpu.matmul %88, %89, %cst_28 {dimension_numbers = #tpu.dot_dimension_numbers<[1], [0], [0], [1], [0, 0, 1, 1], [], []>} : vector<32x8xbf16>, vector<8x32xbf16>, vector<32x32xf32> -> vector<32x32xf32>
    %91 = arith.addf %83, %90 : vector<32x32xf32>
    %92 = vector.extract_strided_slice %76 {offsets = [64, 0], sizes = [32, 8], strides = [1, 1]} : vector<128x8xf32> to vector<32x8xf32>
    %93 = vector.extract_strided_slice %13 {offsets = [0, 2], sizes = [1, 1], strides = [1, 1]} : vector<1x4xf32> to vector<1x1xf32>
    %94 = vector.broadcast %93 : vector<1x1xf32> to vector<32x8xf32>
    %95 = arith.mulf %92, %94 : vector<32x8xf32>
    %96 = arith.truncf %95 : vector<32x8xf32> to vector<32x8xbf16>
    %97 = vector.extract_strided_slice %22 {offsets = [16, 0], sizes = [8, 32], strides = [1, 1]} : vector<32x32xbf16> to vector<8x32xbf16>
    %cst_29 = arith.constant dense<0.000000e+00> : vector<32x32xf32>
    %98 = tpu.matmul %96, %97, %cst_29 {dimension_numbers = #tpu.dot_dimension_numbers<[1], [0], [0], [1], [0, 0, 1, 1], [], []>} : vector<32x8xbf16>, vector<8x32xbf16>, vector<32x32xf32> -> vector<32x32xf32>
    %99 = arith.addf %91, %98 : vector<32x32xf32>
    %100 = vector.extract_strided_slice %76 {offsets = [96, 0], sizes = [32, 8], strides = [1, 1]} : vector<128x8xf32> to vector<32x8xf32>
    %101 = vector.extract_strided_slice %13 {offsets = [0, 3], sizes = [1, 1], strides = [1, 1]} : vector<1x4xf32> to vector<1x1xf32>
    %102 = vector.broadcast %101 : vector<1x1xf32> to vector<32x8xf32>
    %103 = arith.mulf %100, %102 : vector<32x8xf32>
    %104 = arith.truncf %103 : vector<32x8xf32> to vector<32x8xbf16>
    %105 = vector.extract_strided_slice %22 {offsets = [24, 0], sizes = [8, 32], strides = [1, 1]} : vector<32x32xbf16> to vector<8x32xbf16>
    %cst_30 = arith.constant dense<0.000000e+00> : vector<32x32xf32>
    %106 = tpu.matmul %104, %105, %cst_30 {dimension_numbers = #tpu.dot_dimension_numbers<[1], [0], [0], [1], [0, 0, 1, 1], [], []>} : vector<32x8xbf16>, vector<8x32xbf16>, vector<32x32xf32> -> vector<32x32xf32>
    %107 = arith.addf %99, %106 : vector<32x32xf32>
    %108 = vector.extract_strided_slice %29 {offsets = [32, 0], sizes = [32, 32], strides = [1, 1]} : vector<64x32xf32> to vector<32x32xf32>
    %109 = vector.extract_strided_slice %32 {offsets = [32, 0], sizes = [32, 32], strides = [1, 1]} : vector<64x32xf32> to vector<32x32xf32>
    %110 = vector.extract_strided_slice %35 {offsets = [32, 0], sizes = [32, 32], strides = [1, 1]} : vector<64x32xf32> to vector<32x32xf32>
    %111 = arith.truncf %109 : vector<32x32xf32> to vector<32x32xbf16>
    %cst_31 = arith.constant dense<0.000000e+00> : vector<128x32xf32>
    %112 = tpu.matmul %24, %111, %cst_31 {dimension_numbers = #tpu.dot_dimension_numbers<[1], [0], [0], [1], [0, 0, 1, 1], [], []>} : vector<128x32xbf16>, vector<32x32xbf16>, vector<128x32xf32> -> vector<128x32xf32>
    %113 = arith.truncf %110 : vector<32x32xf32> to vector<32x32xbf16>
    %cst_32 = arith.constant dense<0.000000e+00> : vector<128x32xf32>
    %114 = tpu.matmul %26, %113, %cst_32 {dimension_numbers = #tpu.dot_dimension_numbers<[1], [0], [0], [1], [0, 0, 1, 1], [], []>} : vector<128x32xbf16>, vector<32x32xbf16>, vector<128x32xf32> -> vector<128x32xf32>
    %115 = vector.extract_strided_slice %112 {offsets = [0, 0], sizes = [32, 8], strides = [1, 1]} : vector<128x32xf32> to vector<32x8xf32>
    %116 = vector.extract_strided_slice %112 {offsets = [32, 8], sizes = [32, 8], strides = [1, 1]} : vector<128x32xf32> to vector<32x8xf32>
    %117 = vector.extract_strided_slice %112 {offsets = [64, 16], sizes = [32, 8], strides = [1, 1]} : vector<128x32xf32> to vector<32x8xf32>
    %118 = vector.extract_strided_slice %112 {offsets = [96, 24], sizes = [32, 8], strides = [1, 1]} : vector<128x32xf32> to vector<32x8xf32>
    %119 = tpu.concatenate %115, %116, %117, %118 in 0 : vector<32x8xf32>, vector<32x8xf32>, vector<32x8xf32>, vector<32x8xf32> -> vector<128x8xf32>
    %120 = vector.extract_strided_slice %114 {offsets = [0, 0], sizes = [32, 8], strides = [1, 1]} : vector<128x32xf32> to vector<32x8xf32>
    %121 = vector.extract_strided_slice %114 {offsets = [32, 8], sizes = [32, 8], strides = [1, 1]} : vector<128x32xf32> to vector<32x8xf32>
    %122 = vector.extract_strided_slice %114 {offsets = [64, 16], sizes = [32, 8], strides = [1, 1]} : vector<128x32xf32> to vector<32x8xf32>
    %123 = vector.extract_strided_slice %114 {offsets = [96, 24], sizes = [32, 8], strides = [1, 1]} : vector<128x32xf32> to vector<32x8xf32>
    %124 = tpu.concatenate %120, %121, %122, %123 in 0 : vector<32x8xf32>, vector<32x8xf32>, vector<32x8xf32>, vector<32x8xf32> -> vector<128x8xf32>
    %125 = vector.extract_strided_slice %108 {offsets = [0, 0], sizes = [32, 8], strides = [1, 1]} : vector<32x32xf32> to vector<32x8xf32>
    %126 = vector.extract_strided_slice %108 {offsets = [0, 8], sizes = [32, 8], strides = [1, 1]} : vector<32x32xf32> to vector<32x8xf32>
    %127 = vector.extract_strided_slice %108 {offsets = [0, 16], sizes = [32, 8], strides = [1, 1]} : vector<32x32xf32> to vector<32x8xf32>
    %128 = vector.extract_strided_slice %108 {offsets = [0, 24], sizes = [32, 8], strides = [1, 1]} : vector<32x32xf32> to vector<32x8xf32>
    %129 = tpu.concatenate %125, %126, %127, %128 in 0 : vector<32x8xf32>, vector<32x8xf32>, vector<32x8xf32>, vector<32x8xf32> -> vector<128x8xf32>
    %130 = arith.truncf %129 : vector<128x8xf32> to vector<128x8xbf16>
    %cst_33 = arith.constant dense<0.000000e+00> : vector<128x128xf32>
    %131 = tpu.matmul %130, %119, %cst_33 {dimension_numbers = #tpu.dot_dimension_numbers<[1], [1], [0], [0], [0, 0, 1, 0], [], []>} : vector<128x8xbf16>, vector<128x8xf32>, vector<128x128xf32> -> vector<128x128xf32>
    %cst_34 = arith.constant 0.353553385 : f32
    %132 = vector.broadcast %cst_34 : f32 to vector<128x128xf32>
    %133 = arith.mulf %131, %132 : vector<128x128xf32>
    %c1 = arith.constant 1 : index
    %c0_35 = arith.constant 0 : index
    %134 = vector.load %arg7[%c1, %c0_35] : memref<2x128xf32, #tpu.memory_space<vmem>>, vector<1x128xf32>
    %135 = vector.broadcast %134 : vector<1x128xf32> to vector<128x128xf32>
    %136 = arith.addf %133, %135 : vector<128x128xf32>
    %cst_36 = arith.constant dense<0xFF800000> : vector<128xf32>
    %137 = vector.multi_reduction <maximumf>, %136, %cst_36 [1] : vector<128x128xf32> to vector<128xf32>
    %138 = vector.shape_cast %137 : vector<128xf32> to vector<128x1xf32>
    %139 = vector.broadcast %138 : vector<128x1xf32> to vector<128x128xf32>
    %140 = arith.subf %136, %139 : vector<128x128xf32>
    %141 = math.exp %140 : vector<128x128xf32>
    %cst_37 = arith.constant dense<0.000000e+00> : vector<128xf32>
    %142 = vector.multi_reduction <add>, %141, %cst_37 [1] : vector<128x128xf32> to vector<128xf32>
    %143 = vector.shape_cast %142 : vector<128xf32> to vector<128x1xf32>
    %144 = tpu.reciprocal %143 {approx = true} : vector<128x1xf32> -> vector<128x1xf32>
    %145 = vector.broadcast %144 : vector<128x1xf32> to vector<128x128xf32>
    %146 = arith.mulf %141, %145 : vector<128x128xf32>
    %147 = arith.truncf %146 : vector<128x128xf32> to vector<128x128xbf16>
    %cst_38 = arith.constant dense<0.000000e+00> : vector<128x8xf32>
    %148 = tpu.matmul %147, %124, %cst_38 {dimension_numbers = #tpu.dot_dimension_numbers<[1], [0], [0], [1], [0, 0, 1, 1], [], []>} : vector<128x128xbf16>, vector<128x8xf32>, vector<128x8xf32> -> vector<128x8xf32>
    %149 = vector.extract_strided_slice %148 {offsets = [0, 0], sizes = [32, 8], strides = [1, 1]} : vector<128x8xf32> to vector<32x8xf32>
    %150 = vector.extract_strided_slice %13 {offsets = [0, 0], sizes = [1, 1], strides = [1, 1]} : vector<1x4xf32> to vector<1x1xf32>
    %151 = vector.broadcast %150 : vector<1x1xf32> to vector<32x8xf32>
    %152 = arith.mulf %149, %151 : vector<32x8xf32>
    %153 = arith.truncf %152 : vector<32x8xf32> to vector<32x8xbf16>
    %154 = vector.extract_strided_slice %22 {offsets = [0, 0], sizes = [8, 32], strides = [1, 1]} : vector<32x32xbf16> to vector<8x32xbf16>
    %cst_39 = arith.constant dense<0.000000e+00> : vector<32x32xf32>
    %155 = tpu.matmul %153, %154, %cst_39 {dimension_numbers = #tpu.dot_dimension_numbers<[1], [0], [0], [1], [0, 0, 1, 1], [], []>} : vector<32x8xbf16>, vector<8x32xbf16>, vector<32x32xf32> -> vector<32x32xf32>
    %156 = vector.extract_strided_slice %148 {offsets = [32, 0], sizes = [32, 8], strides = [1, 1]} : vector<128x8xf32> to vector<32x8xf32>
    %157 = vector.extract_strided_slice %13 {offsets = [0, 1], sizes = [1, 1], strides = [1, 1]} : vector<1x4xf32> to vector<1x1xf32>
    %158 = vector.broadcast %157 : vector<1x1xf32> to vector<32x8xf32>
    %159 = arith.mulf %156, %158 : vector<32x8xf32>
    %160 = arith.truncf %159 : vector<32x8xf32> to vector<32x8xbf16>
    %161 = vector.extract_strided_slice %22 {offsets = [8, 0], sizes = [8, 32], strides = [1, 1]} : vector<32x32xbf16> to vector<8x32xbf16>
    %cst_40 = arith.constant dense<0.000000e+00> : vector<32x32xf32>
    %162 = tpu.matmul %160, %161, %cst_40 {dimension_numbers = #tpu.dot_dimension_numbers<[1], [0], [0], [1], [0, 0, 1, 1], [], []>} : vector<32x8xbf16>, vector<8x32xbf16>, vector<32x32xf32> -> vector<32x32xf32>
    %163 = arith.addf %155, %162 : vector<32x32xf32>
    %164 = vector.extract_strided_slice %148 {offsets = [64, 0], sizes = [32, 8], strides = [1, 1]} : vector<128x8xf32> to vector<32x8xf32>
    %165 = vector.extract_strided_slice %13 {offsets = [0, 2], sizes = [1, 1], strides = [1, 1]} : vector<1x4xf32> to vector<1x1xf32>
    %166 = vector.broadcast %165 : vector<1x1xf32> to vector<32x8xf32>
    %167 = arith.mulf %164, %166 : vector<32x8xf32>
    %168 = arith.truncf %167 : vector<32x8xf32> to vector<32x8xbf16>
    %169 = vector.extract_strided_slice %22 {offsets = [16, 0], sizes = [8, 32], strides = [1, 1]} : vector<32x32xbf16> to vector<8x32xbf16>
    %cst_41 = arith.constant dense<0.000000e+00> : vector<32x32xf32>
    %170 = tpu.matmul %168, %169, %cst_41 {dimension_numbers = #tpu.dot_dimension_numbers<[1], [0], [0], [1], [0, 0, 1, 1], [], []>} : vector<32x8xbf16>, vector<8x32xbf16>, vector<32x32xf32> -> vector<32x32xf32>
    %171 = arith.addf %163, %170 : vector<32x32xf32>
    %172 = vector.extract_strided_slice %148 {offsets = [96, 0], sizes = [32, 8], strides = [1, 1]} : vector<128x8xf32> to vector<32x8xf32>
    %173 = vector.extract_strided_slice %13 {offsets = [0, 3], sizes = [1, 1], strides = [1, 1]} : vector<1x4xf32> to vector<1x1xf32>
    %174 = vector.broadcast %173 : vector<1x1xf32> to vector<32x8xf32>
    %175 = arith.mulf %172, %174 : vector<32x8xf32>
    %176 = arith.truncf %175 : vector<32x8xf32> to vector<32x8xbf16>
    %177 = vector.extract_strided_slice %22 {offsets = [24, 0], sizes = [8, 32], strides = [1, 1]} : vector<32x32xbf16> to vector<8x32xbf16>
    %cst_42 = arith.constant dense<0.000000e+00> : vector<32x32xf32>
    %178 = tpu.matmul %176, %177, %cst_42 {dimension_numbers = #tpu.dot_dimension_numbers<[1], [0], [0], [1], [0, 0, 1, 1], [], []>} : vector<32x8xbf16>, vector<8x32xbf16>, vector<32x32xf32> -> vector<32x32xf32>
    %179 = arith.addf %171, %178 : vector<32x32xf32>
    %180 = tpu.concatenate %107, %179 in 0 : vector<32x32xf32>, vector<32x32xf32> -> vector<64x32xf32>
    %181 = vector.broadcast %5 : vector<1x32xf32> to vector<64x32xf32>
    %182 = arith.addf %180, %181 : vector<64x32xf32>
    %183 = arith.addf %182, %0 : vector<64x32xf32>
    %cst_43 = arith.constant dense<0.000000e+00> : vector<64xf32>
    %184 = vector.multi_reduction <add>, %183, %cst_43 [1] : vector<64x32xf32> to vector<64xf32>
    %185 = vector.shape_cast %184 : vector<64xf32> to vector<64x1xf32>
    %cst_44 = arith.constant 3.200000e+01 : f32
    %186 = vector.broadcast %cst_44 : f32 to vector<64x1xf32>
    %187 = arith.divf %185, %186 : vector<64x1xf32>
    %188 = vector.broadcast %187 : vector<64x1xf32> to vector<64x32xf32>
    %189 = arith.subf %183, %188 : vector<64x32xf32>
    %190 = arith.mulf %189, %189 : vector<64x32xf32>
    %cst_45 = arith.constant dense<0.000000e+00> : vector<64xf32>
    %191 = vector.multi_reduction <add>, %190, %cst_45 [1] : vector<64x32xf32> to vector<64xf32>
    %192 = vector.shape_cast %191 : vector<64xf32> to vector<64x1xf32>
    %cst_46 = arith.constant 3.200000e+01 : f32
    %193 = vector.broadcast %cst_46 : f32 to vector<64x1xf32>
    %194 = arith.divf %192, %193 : vector<64x1xf32>
    %195 = vector.broadcast %187 : vector<64x1xf32> to vector<64x32xf32>
    %196 = arith.subf %183, %195 : vector<64x32xf32>
    %cst_47 = arith.constant 9.99999996E-13 : f32
    %197 = vector.broadcast %cst_47 : f32 to vector<64x1xf32>
    %198 = arith.addf %194, %197 : vector<64x1xf32>
    %199 = math.rsqrt %198 : vector<64x1xf32>
    %200 = vector.broadcast %199 : vector<64x1xf32> to vector<64x32xf32>
    %201 = arith.mulf %196, %200 : vector<64x32xf32>
    %202 = vector.broadcast %6 : vector<1x32xf32> to vector<64x32xf32>
    %203 = arith.mulf %201, %202 : vector<64x32xf32>
    %204 = vector.broadcast %7 : vector<1x32xf32> to vector<64x32xf32>
    %205 = arith.addf %203, %204 : vector<64x32xf32>
    %c0_48 = arith.constant 0 : index
    %c0_49 = arith.constant 0 : index
    %206 = vector.load %arg10[%c0_48, %c0_49] : memref<64x32xf32, #tpu.memory_space<vmem>>, vector<64x32xf32>
    tpu.vector_store %arg10[%c0_48, %c0_49], %205 {strides = array<i32>} : memref<64x32xf32, #tpu.memory_space<vmem>>, vector<64x32xf32>,
    return
  }
  func.func @transform_0(%arg0: i32) -> (i32, i32) {
    %c0_i32 = arith.constant 0 : i32
    %c0_i32_0 = arith.constant 0 : i32
    %c0_i32_1 = arith.constant 0 : i32
    return %c0_i32, %c0_i32_0 : i32, i32
  }
  func.func @transform_1(%arg0: i32) -> (i32, i32) {
    %c0_i32 = arith.constant 0 : i32
    %c0_i32_0 = arith.constant 0 : i32
    %c0_i32_1 = arith.constant 0 : i32
    return %c0_i32, %c0_i32_0 : i32, i32
  }
  func.func @transform_2(%arg0: i32) -> (i32, i32) {
    %c0_i32 = arith.constant 0 : i32
    %c0_i32_0 = arith.constant 0 : i32
    %c0_i32_1 = arith.constant 0 : i32
    return %c0_i32, %c0_i32_0 : i32, i32
  }
  func.func @transform_3(%arg0: i32) -> (i32, i32) {
    %c0_i32 = arith.constant 0 : i32
    %c0_i32_0 = arith.constant 0 : i32
    %c0_i32_1 = arith.constant 0 : i32
    return %c0_i32, %c0_i32_0 : i32, i32
  }
  func.func @transform_4(%arg0: i32) -> (i32, i32) {
    %c0_i32 = arith.constant 0 : i32
    %c0_i32_0 = arith.constant 0 : i32
    %c0_i32_1 = arith.constant 0 : i32
    return %c0_i32, %c0_i32_0 : i32, i32
  }
  func.func @transform_5(%arg0: i32) -> (i32, i32) {
    %c0_i32 = arith.constant 0 : i32
    %c0_i32_0 = arith.constant 0 : i32
    %c0_i32_1 = arith.constant 0 : i32
    return %c0_i32, %c0_i32_0 : i32, i32
  }
  func.func @transform_6(%arg0: i32) -> (i32, i32) {
    %c0_i32 = arith.constant 0 : i32
    %c0_i32_0 = arith.constant 0 : i32
    %c0_i32_1 = arith.constant 0 : i32
    return %c0_i32, %c0_i32_0 : i32, i32
  }
  func.func @transform_7(%arg0: i32) -> (i32, i32) {
    %c0_i32 = arith.constant 0 : i32
    %c0_i32_0 = arith.constant 0 : i32
    %c0_i32_1 = arith.constant 0 : i32
    return %c0_i32, %c0_i32_0 : i32, i32
  }
  func.func @transform_8(%arg0: i32) -> (i32, i32) {
    %c0_i32 = arith.constant 0 : i32
    %c0_i32_0 = arith.constant 0 : i32
    %c0_i32_1 = arith.constant 0 : i32
    return %c0_i32, %c0_i32_0 : i32, i32
  }
  func.func @transform_9(%arg0: i32) -> (i32, i32) {
    %c0_i32 = arith.constant 0 : i32
    %c0_i32_0 = arith.constant 0 : i32
    %c0_i32_1 = arith.constant 0 : i32
    return %c0_i32, %c0_i32_0 : i32, i32
  }
}

</mosaic_0001>

<bundles_post_ra>
// kernel: tpu_custom_call.1
= control target key start
LH: loop header
LB: loop body
LE: loop exit
PB: predicated region body
PF: predicated region fallthrough
CT: control target
= control target key end

     0   :  { %vm128_vm0 = vcmask 261120   ;;  %v124_v33 = vlaneseq  ;;  %vm722_vm1 = vcmask 64512   ;;  %s3653_s12 = smov 104   ;;  %s3654_s20 = smov 112   ;;  %vm1260_vm2 = vcmask 1043456   ;;  %s4879_s2 = inlined_call_operand.vmem [shape: f32[32,32], index: 2, kind: input, shape index: {}]   ;;  %s4880_s0 = inlined_call_operand.vmem [shape: f32[64,32], index: 0, kind: input, shape index: {}]   ;;  %s4881_s4 = inlined_call_operand.vmem [shape: f32[128,32], index: 4, kind: input, shape index: {}]   ;;  %s4882_s1 = inlined_call_operand.vmem [shape: f32[32,32], index: 1, kind: input, shape index: {}]   ;;  %s4883_s3 = inlined_call_operand.vmem [shape: f32[32,32], index: 3, kind: input, shape index: {}]   ;;  %s4884_s7 = inlined_call_operand.vmem [shape: f32[8,32], index: 7, kind: input, shape index: {}]   ;;  %s4885_s5 = inlined_call_operand.vmem [shape: f32[128,32], index: 5, kind: input, shape index: {}]   ;;  %s4886_s8 = inlined_call_operand.vmem [shape: f32[32,32], index: 8, kind: input, shape index: {}]   ;;  %s4887_s6 = inlined_call_operand.vmem [shape: f32[2,128], index: 6, kind: input, shape index: {}]   ;;  %s4888_s9 = inlined_call_operand.vmem [shape: f32[64,32], index: 9, kind: output, shape index: {}]  }
   0x1   :  { %v60_v0 = vld [vmem:[%s4879_s2 + $0x10] sm:$0xff]  ;;  %v61_v1 = vld [vmem:[%s4879_s2 + $0x18] sm:$0xff]  ;;  %v58_v2 = vld [vmem:[%s4879_s2] sm:$0xff]  ;;  %s3655_s21 = smov 120   ;;  %s3656_s26 = smov 127  }
   0x2   :  { %v63_v3 = vpack.c.bf16 %v61_v1, %v60_v0  ;;  %v59_v4 = vld [vmem:[%s4879_s2 + $0x8] sm:$0xff]  ;;  %v33_v5 = vld [vmem:[%s4880_s0] sm:$0xff]  ;;  %v35_v9 = vld [vmem:[%s4880_s0 + $0x10] sm:$0xff]  ;;  %v3791_v34 = vshrl.u32 %v124_v33, 7  ;;  %s3657_s27 = smov 126   ;;  %s3658_s11 = smov 125  }
   0x3   :  { %v34_v6 = vld [vmem:[%s4880_s0 + $0x8] sm:$0xff]  ;;  %v62_v7 = vpack.c.bf16 %v59_v4, %v58_v2  ;;  %v36_v10 = vld [vmem:[%s4880_s0 + $0x18] sm:$0xff]  ;;  %v37_v12 = vld [vmem:[%s4880_s0 + $0x20] sm:$0xff] }
   0x4   :  { %v48_v8 = vpack.c.bf16 %v34_v6, %v33_v5  ;;  %3070 = vmatprep.subr.bf16.mxu1 %v63_v3  ;;  %v49_v11 = vpack.c.bf16 %v36_v10, %v35_v9  ;;  %v38_v13 = vld [vmem:[%s4880_s0 + $0x28] sm:$0xff]  ;;  %v39_v15 = vld [vmem:[%s4880_s0 + $0x30] sm:$0xff]  ;;  %v40_v16 = vld [vmem:[%s4880_s0 + $0x38] sm:$0xff]  ;;  %4902 = vst [vmem:[#allocation2_spill] sm:$0xff] %v3791_v34  ;;  %v208_v35 = vsub.s32 1, %v3791_v34 }
   0x5   :  { %3071 = vmatpush3.bf16.msra.mxu1 %v63_v3  ;;  %v50_v14 = vpack.c.bf16 %v38_v13, %v37_v12  ;;  %v51_v17 = vpack.c.bf16 %v40_v16, %v39_v15  ;;  %v76_v18 = vld [vmem:[%s4881_s4] sm:$0xff]  ;;  %v77_v19 = vld [vmem:[%s4881_s4 + $0x8] sm:$0xff]  ;;  %v54_v21 = vld [vmem:[%s4882_s1 + $0x10] sm:$0xff] }
   0x6   :  { %3074 = vmatprep.mubr.msk.bf16.mxu1 %vm128_vm0, %v48_v8  ;;  %3072 = vmatprep.subr.bf16.mxu1 %v62_v7  ;;  %v3756_v20 = vpack.c.bf16 %v77_v19, %v76_v18  ;;  %v55_v22 = vld [vmem:[%s4882_s1 + $0x18] sm:$0xff]  ;;  %v52_v23 = vld [vmem:[%s4882_s1] sm:$0xff]  ;;  %v53_v25 = vld [vmem:[%s4882_s1 + $0x8] sm:$0xff] }
   0x7   :  { %3062 = vmatprep.mubr.msk.bf16.mxu0 %vm128_vm0, %v48_v8  ;;  %v57_v24 = vpack.c.bf16 %v55_v22, %v54_v21  ;;  %v56_v26 = vpack.c.bf16 %v53_v25, %v52_v23  ;;  %v66_v27 = vld [vmem:[%s4883_s3 + $0x10] sm:$0xff]  ;;  %v67_v28 = vld [vmem:[%s4883_s3 + $0x18] sm:$0xff]  ;;  %v64_v30 = vld [vmem:[%s4883_s3] sm:$0xff] }
   0x8   :  { %v69_v29 = vpack.c.bf16 %v67_v28, %v66_v27  ;;  %v65_v31 = vld [vmem:[%s4883_s3 + $0x8] sm:$0xff]  ;;  %v3797_v36 = vld [vmem:[%s4884_s7] sm:$0xff]  ;;  %v78_v48 = vld [vmem:[%s4881_s4 + $0x10] sm:$0xff] }
   0x9   :  { %3073 = vmatpush3.bf16.msra.mxu1 %v62_v7  ;;  %3058 = vmatprep.subr.bf16.mxu0 %v57_v24  ;;  %v68_v32 = vpack.c.bf16 %v65_v31, %v64_v30  ;;  %v3800_v38 = vrot.slane %v3797_v36, %v208_v35  ;;  %v79_v49 = vld [vmem:[%s4881_s4 + $0x18] sm:$0xff]  ;;  %v80_v50 = vld [vmem:[%s4881_s4 + $0x20] sm:$0xff]  ;;  %v81_v51 = vld [vmem:[%s4881_s4 + $0x28] sm:$0xff]  ;;  %v277_v30 = vsub.s32 2, %v3791_v34 }
   0xa   :  { %3059 = vmatpush3.bf16.msra.mxu0 %v57_v24  ;;  %v3818_v52 = vpack.c.bf16 %v79_v49, %v78_v48  ;;  %v3820_v53 = vpack.c.bf16 %v81_v51, %v80_v50  ;;  %v82_v54 = vld [vmem:[%s4881_s4 + $0x30] sm:$0xff]  ;;  %v83_v55 = vld [vmem:[%s4881_s4 + $0x38] sm:$0xff]  ;;  %v84_v56 = vld [vmem:[%s4881_s4 + $0x40] sm:$0xff] }
   0xb   :  { %3060 = vmatprep.subr.bf16.mxu0 %v56_v26  ;;  %v85_v57 = vld [vmem:[%s4881_s4 + $0x48] sm:$0xff]  ;;  %v3838_v58 = vpack.c.bf16 %v83_v55, %v82_v54  ;;  %v86_v60 = vld [vmem:[%s4881_s4 + $0x50] sm:$0xff]  ;;  %v87_v61 = vld [vmem:[%s4881_s4 + $0x58] sm:$0xff] }
   0xc   :  { %3075 = vmatmul.mubr.msk.bf16.vlgmr.msra.gmra.mxu1 %vm128_vm0, %v49_v11  ;;  %v3840_v59 = vpack.c.bf16 %v85_v57, %v84_v56  ;;  %v88_v62 = vld [vmem:[%s4881_s4 + $0x60] sm:$0xff]  ;;  %v89_v63 = vld [vmem:[%s4881_s4 + $0x68] sm:$0xff]  ;;  %v3858_v0 = vpack.c.bf16 %v87_v61, %v86_v60  ;;  %v90_v2 = vld [vmem:[%s4881_s4 + $0x70] sm:$0xff] }
   0xd   :  { %3078 = vmatprep.mubr.msk.bf16.mxu1 %vm128_vm0, %v50_v14  ;;  %v3860_v1 = vpack.c.bf16 %v89_v63, %v88_v62  ;;  %v91_v3 = vld [vmem:[%s4881_s4 + $0x78] sm:$0xff] }
   0xe   :  { %3061 = vmatpush3.bf16.msra.mxu0 %v56_v26  ;;  %v3872_v4 = vpack.c.bf16 %v91_v3, %v90_v2  ;;  %v100_v2 = vld [vmem:[%s4885_s5] sm:$0xff]  ;;  %v101_v3 = vld [vmem:[%s4885_s5 + $0x8] sm:$0xff] }
   0xf   :  { %3082 = vmatprep.subr.bf16.mxu0 %v69_v29 }
  0x11   :  { %3063 = vmatmul.mubr.msk.bf16.vlgmr.msra.gmra.mxu0 %vm128_vm0, %v49_v11 }
  0x12   :  { %3066 = vmatprep.mubr.msk.bf16.mxu0 %vm128_vm0, %v50_v14  ;;  %3083 = vmatpush3.bf16.msra.mxu0 %v69_v29 }
  0x13   :  { %3084 = vmatprep.subr.bf16.mxu0 %v68_v32 }
  0x14   :  { %3079 = vmatmul.mubr.msk.bf16.gmra.mxu1 %vm128_vm0, %v51_v17 }
  0x15   :  { %3098 = vmatprep.mubr.msk.bf16.mxu1 %vm128_vm0, %v3756_v20 }
  0x16   :  { %3085 = vmatpush3.bf16.msra.mxu0 %v68_v32 }
  0x19   :  { %3067 = vmatmul.mubr.msk.bf16.gmra.mxu0 %vm128_vm0, %v51_v17 }
  0x1a   :  { %3086 = vmatprep.mubr.msk.bf16.mxu0 %vm128_vm0, %v48_v8 }
  0x21   :  { %3087 = vmatmul.mubr.msk.bf16.vlgmr.msra.gmra.mxu0 %vm128_vm0, %v49_v11  ;;  %v126_v11 = vsub.s32 0, %v3791_v34 }
  0x22   :  { %3090 = vmatprep.mubr.msk.bf16.mxu0 %vm128_vm0, %v50_v14 }
  0x23   :  { %v127_v13 = vrot.slane %v3797_v36, %v126_v11 }
  0x29   :  { %3091 = vmatmul.mubr.msk.bf16.gmra.mxu0 %vm128_vm0, %v51_v17 }
  0xcc   :  { %v3076_v37 = vpop.f32.mrf.mxu1 }
  0xcd   :  { %v253_v41 = vadd.f32 %v3076_v37, %v3800_v38 }
  0xce   :  { %v244_v39 = vpop.f32.mrf.mxu1 }
  0xcf   :  { %v245_v44 = vadd.f32 %v244_v39, %v3800_v38  ;;  %v3909_v39 = vrot.slane %v3797_v36, %v277_v30 }
  0xd0   :  { %v3077_v40 = vpop.f32.mrf.mxu1 }
  0xd1   :  { %v256_v42 = vadd.f32 %v3077_v40, %v3800_v38  ;;  %v3064_v12 = vpop.f32.mrf.mxu0 }
  0xd2   :  { %v247_v43 = vpop.f32.mrf.mxu1  ;;  %v3884_v15 = vadd.f32 %v3064_v12, %v127_v13 }
  0xd3   :  { %v345_v45 = vpack.c.bf16 %v256_v42, %v253_v41  ;;  %v248_v46 = vadd.f32 %v247_v43, %v3800_v38  ;;  %v175_v14 = vpop.f32.mrf.mxu0 }
  0xd4   :  { %v3080_v5 = vpop.f32.mrf.mxu1  ;;  %v176_v17 = vadd.f32 %v175_v14, %v127_v13 }
  0xd5   :  { %v344_v47 = vpack.c.bf16 %v248_v46, %v245_v44  ;;  %3094 = vmatprep.subr.bf16.mxu1 %v345_v45  ;;  %v269_v7 = vadd.f32 %v3080_v5, %v3800_v38  ;;  %v3065_v16 = vpop.f32.mrf.mxu0  ;;  %v3941_v5 = vpack.c.bf16 %v101_v3, %v100_v2  ;;  %v114_v3 = vld [vmem:[%s4885_s5 + $0x70] sm:$0xff] }
  0xd6   :  { %3095 = vmatpush3.bf16.msra.mxu1 %v345_v45  ;;  %v3876_v6 = vpop.f32.mrf.mxu1  ;;  %v3886_v18 = vadd.f32 %v3065_v16, %v127_v13  ;;  %v104_v16 = vld [vmem:[%s4885_s5 + $0x20] sm:$0xff] }
  0xd7   :  { %3096 = vmatprep.subr.bf16.mxu1 %v344_v47  ;;  %v178_v19 = vpop.f32.mrf.mxu0  ;;  %4903 = vst [vmem:[#allocation3_spill] sm:$0xff] %v3941_v5  ;;  %3118 = vmatprep.mubr.msk.bf16.mxu0 %vm128_vm0, %v3941_v5 }
  0xd8   :  { %v3081_v8 = vpop.f32.mrf.mxu1  ;;  %v715_v21 = vpack.c.bf16 %v3886_v18, %v3884_v15  ;;  %v179_v22 = vadd.f32 %v178_v19, %v127_v13  ;;  %v3892_v23 = vpack.i.bf16 %v3886_v18, %v3884_v15 }
  0xd9   :  { %v272_v9 = vadd.f32 %v3081_v8, %v3800_v38  ;;  %v3068_v26 = vpop.f32.mrf.mxu0  ;;  %v103_v8 = vld [vmem:[%s4885_s5 + $0x18] sm:$0xff] }
  0xda   :  { %3097 = vmatpush3.bf16.msra.mxu1 %v344_v47  ;;  %v3894_v24 = vpack.i.bf16 %v179_v22, %v176_v17  ;;  %v714_v25 = vpack.c.bf16 %v179_v22, %v176_v17  ;;  %v3896_v27 = vadd.f32 %v3068_v26, %v127_v13  ;;  %v3915_v50 = vpop.f32.mrf.mxu1  ;;  %v105_v17 = vld [vmem:[%s4885_s5 + $0x28] sm:$0xff]  ;;  %v106_v22 = vld [vmem:[%s4885_s5 + $0x30] sm:$0xff] }
  0xdb   :  { %v3880_v10 = vpack.c.bf16 %v272_v9, %v269_v7  ;;  %v191_v28 = vpop.f32.mrf.mxu0  ;;  %v102_v7 = vld [vmem:[%s4885_s5 + $0x10] sm:$0xff]  ;;  %v3961_v19 = vpack.c.bf16 %v105_v17, %v104_v16 }
  0xdc   :  { %v3899_v29 = vadd.f32 %v191_v28, %v127_v13  ;;  %v3949_v11 = vpack.c.bf16 %v103_v8, %v102_v7  ;;  %v115_v7 = vld [vmem:[%s4885_s5 + $0x78] sm:$0xff] }
  0xdd   :  { %3099 = vmatmul.mubr.msk.bf16.vlgmr.msra.gmra.mxu1 %vm128_vm0, %v3818_v52  ;;  %v3069_v31 = vpop.f32.mrf.mxu0  ;;  %4905 = vst [vmem:[#allocation5_spill] sm:$0xff] %v3961_v19  ;;  %v4013_v8 = vpack.c.bf16 %v115_v7, %v114_v3 }
  0xde   :  { %3102 = vmatprep.mubr.msk.bf16.mxu1 %vm128_vm0, %v3820_v53  ;;  %v3902_v32 = vadd.f32 %v3069_v31, %v127_v13  ;;  %4904 = vst [vmem:[#allocation4_spill] sm:$0xff] %v3949_v11 }
  0xdf   :  { %v194_v33 = vpop.f32.mrf.mxu0  ;;  %4910 = vst [vmem:[#allocation10_spill] sm:$0xff] %v4013_v8 }
  0xe0   :  { %v3906_v37 = vadd.f32 %v194_v33, %v127_v13  ;;  %v3925_v56 = vpack.i.bf16 %v3902_v32, %v3896_v27 }
  0xe1   :  { %v3088_v40 = vpop.f32.mrf.mxu0 }
  0xe2   :  { %v322_v42 = vadd.f32 %v3088_v40, %v3909_v39  ;;  %v3929_v57 = vpack.i.bf16 %v3906_v37, %v3899_v29  ;;  %v108_v40 = vld [vmem:[%s4885_s5 + $0x40] sm:$0xff] }
  0xe3   :  { %v313_v41 = vpop.f32.mrf.mxu0 }
  0xe4   :  { %v314_v44 = vadd.f32 %v313_v41, %v3909_v39  ;;  %v109_v41 = vld [vmem:[%s4885_s5 + $0x48] sm:$0xff] }
  0xe5   :  { %3103 = vmatmul.mubr.msk.bf16.gmra.mxu1 %vm128_vm0, %v3838_v58  ;;  %v3089_v43 = vpop.f32.mrf.mxu0 }
  0xe6   :  { %3106 = vmatprep.mubr.msk.bf16.mxu1 %vm128_vm0, %v3840_v59  ;;  %v325_v45 = vadd.f32 %v3089_v43, %v3909_v39  ;;  %v110_v43 = vld [vmem:[%s4885_s5 + $0x50] sm:$0xff] }
  0xe7   :  { %v316_v46 = vpop.f32.mrf.mxu0 }
  0xe8   :  { %v468_v47 = vpack.c.bf16 %v325_v45, %v322_v42  ;;  %v317_v48 = vadd.f32 %v316_v46, %v3909_v39  ;;  %v3981_v42 = vpack.c.bf16 %v109_v41, %v108_v40 }
  0xea   :  { %v467_v49 = vpack.c.bf16 %v317_v48, %v314_v44  ;;  %3114 = vmatprep.subr.bf16.mxu0 %v468_v47  ;;  %4907 = vst [vmem:[#allocation7_spill] sm:$0xff] %v3981_v42  ;;  %v111_v44 = vld [vmem:[%s4885_s5 + $0x58] sm:$0xff]  ;;  %v112_v48 = vld [vmem:[%s4885_s5 + $0x60] sm:$0xff] }
  0xeb   :  { %3115 = vmatpush3.bf16.msra.mxu0 %v468_v47  ;;  %v3989_v46 = vpack.c.bf16 %v111_v44, %v110_v43 }
  0xec   :  { %3116 = vmatprep.subr.bf16.mxu0 %v467_v49 }
  0xed   :  { %3107 = vmatmul.mubr.msk.bf16.gmra.mxu1 %vm128_vm0, %v3858_v0  ;;  %4908 = vst [vmem:[#allocation8_spill] sm:$0xff] %v3989_v46 }
  0xee   :  { %3110 = vmatprep.mubr.msk.bf16.mxu1 %vm128_vm0, %v3860_v1 }
  0xef   :  { %3117 = vmatpush3.bf16.msra.mxu0 %v467_v49  ;;  %v113_v49 = vld [vmem:[%s4885_s5 + $0x68] sm:$0xff] }
  0xf0   :  { %v4005_v2 = vpack.c.bf16 %v113_v49, %v112_v48 }
  0xf2   :  { %3119 = vmatmul.mubr.msk.bf16.vlgmr.msra.gmra.mxu0 %vm128_vm0, %v3949_v11  ;;  %4909 = vst [vmem:[#allocation9_spill] sm:$0xff] %v4005_v2 }
  0xf3   :  { %3122 = vmatprep.mubr.msk.bf16.mxu0 %vm128_vm0, %v3961_v19 }
  0xf5   :  { %3111 = vmatmul.mubr.msk.bf16.gmra.mxu1 %vm128_vm0, %v3872_v4 }
  0xf6   :  { %3166 = vmatprep.mubr.msk.bf16.mxu1 %vm722_vm1, %v714_v25  ;;  %v107_v25 = vld [vmem:[%s4885_s5 + $0x38] sm:$0xff] }
  0xf7   :  { %v3969_v28 = vpack.c.bf16 %v107_v25, %v106_v22 }
  0xf9   :  { %4906 = vst [vmem:[#allocation6_spill] sm:$0xff] %v3969_v28 }
  0xfa   :  { %3123 = vmatmul.mubr.msk.bf16.gmra.mxu0 %vm128_vm0, %v3969_v28 }
  0xfb   :  { %3126 = vmatprep.mubr.msk.bf16.mxu0 %vm128_vm0, %v3981_v42 }
 0x102   :  { %3127 = vmatmul.mubr.msk.bf16.gmra.mxu0 %vm128_vm0, %v3989_v46 }
 0x103   :  { %3130 = vmatprep.mubr.msk.bf16.mxu0 %vm128_vm0, %v4005_v2 }
 0x10a   :  { %3131 = vmatmul.mubr.msk.bf16.gmra.mxu0 %vm128_vm0, %v4013_v8 }
 0x19d   :  { %v3917_v51 = vpop.f32.mrf.mxu1 }
 0x19f   :  { %v3919_v54 = vpop.f32.mrf.mxu1 }
 0x1a1   :  { %v3931_v60 = vpop.f32.mrf.mxu1 }
 0x1a3   :  { %v3933_v61 = vpop.f32.mrf.mxu1 }
 0x1a5   :  { %v3104_v62 = vpop.f32.mrf.mxu1 }
 0x1a7   :  { %v420_v63 = vpop.f32.mrf.mxu1 }
 0x1a9   :  { %v3105_v9 = vpop.f32.mrf.mxu1 }
 0x1ab   :  { %v423_v12 = vpop.f32.mrf.mxu1 }
 0x1ad   :  { %v3108_v13 = vpop.f32.mrf.mxu1 }
 0x1af   :  { %v436_v14 = vpop.f32.mrf.mxu1 }
 0x1b1   :  { %v3109_v26 = vpop.f32.mrf.mxu1 }
 0x1b3   :  { %v439_v30 = vpop.f32.mrf.mxu1 }
 0x1b5   :  { %v3112_v31 = vpop.f32.mrf.mxu1 }
 0x1b7   :  { %v452_v33 = vpop.f32.mrf.mxu1 }
 0x1b9   :  { %v3113_v45 = vpop.f32.mrf.mxu1 }
 0x1ba   :  { %624 = vrot.lane.b32.xlu0 %v3113_v45, %s3653_s12 }
 0x1bb   :  { %v455_v47 = vpop.f32.mrf.mxu1 }
 0x1bc   :  { %620 = vrot.lane.b32.xlu1 %v455_v47, %s3653_s12 }
 0x1be   :  { %622 = vrot.lane.b32.xlu0 %v3112_v31, %s3653_s12  ;;  %v72_v31 = vld [vmem:[%s4886_s8 + $0x10] sm:$0xff] }
 0x1c0   :  { %618 = vrot.lane.b32.xlu1 %v452_v33, %s3653_s12  ;;  %v73_v33 = vld [vmem:[%s4886_s8 + $0x18] sm:$0xff] }
 0x1c1   :  { %v4081_v40 = vpack.c.bf16 %v73_v33, %v72_v31 }
 0x1c2   :  { %612 = vrot.lane.b32.xlu0 %v3109_v26, %s3654_s20  ;;  %v3092_v26 = vpop.f32.mrf.mxu0 }
 0x1c3   :  { %v338_v45 = vadd.f32 %v3092_v26, %v3909_v39  ;;  %v4092_v48 = vrot.slane %v4081_v40, 4 }
 0x1c4   :  { %610 = vrot.lane.b32.xlu1 %v3108_v13, %s3654_s20 }
 0x1c5   :  { %4911 = vst [vmem:[#allocation11_spill] sm:$0xff] %v4092_v48  ;;  %v4104_v7 = vsel %vm1260_vm2, %v4092_v48, 0 }
 0x1c6   :  { %608 = vrot.lane.b32.xlu0 %v439_v30, %s3654_s20  ;;  %v4069_v30 = vpop.f32.mrf.mxu0  ;;  %4913 = vst [vmem:[#allocation13_spill] sm:$0xff] %v4104_v7 }
 0x1c8   :  { %606 = vrot.lane.b32.xlu1 %v436_v14, %s3654_s20 }
 0x1ca   :  { %600 = vrot.lane.b32.xlu0 %v3105_v9, %s3655_s21 }
 0x1cc   :  { %598 = vrot.lane.b32.xlu1 %v3104_v62, %s3655_s21 }
 0x1ce   :  { %596 = vrot.lane.b32.xlu0 %v423_v12, %s3655_s21 }
 0x1d0   :  { %594 = vrot.lane.b32.xlu1 %v420_v63, %s3655_s21 }
 0x1d2   :  { %3437 = vrot.lane.b32.xlu0 %v3894_v24, %s3655_s21 }
 0x1d4   :  { %3442 = vrot.lane.b32.xlu1 %v3892_v23, %s3655_s21 }
 0x1d6   :  { %3447 = vrot.lane.b32.xlu0 %v3894_v24, %s3654_s20 }
 0x1d8   :  { %3452 = vrot.lane.b32.xlu1 %v3892_v23, %s3654_s20 }
 0x1da   :  { %3457 = vrot.lane.b32.xlu0 %v3894_v24, %s3653_s12 }
 0x1dc   :  { %3462 = vrot.lane.b32.xlu1 %v3892_v23, %s3653_s12 }
 0x22c   :  { %v625_v62 = vpop.permute.xlu0 %624 }
 0x22d   :  { %3134 = vmatprep.subr.msk.mxu1 %vm722_vm1, %v625_v62 }
 0x22e   :  { %3135 = vmatpush3.xpose.msk.msra.mxu1 %vm722_vm1, %v625_v62  ;;  %v621_v63 = vpop.permute.xlu1 %620 }
 0x230   :  { %v623_v9 = vpop.permute.xlu0 %622 }
 0x231   :  { %3136 = vmatprep.subr.msk.mxu1 %vm722_vm1, %v623_v9 }
 0x232   :  { %3137 = vmatpush3.xpose.msk.msra.mxu1 %vm722_vm1, %v623_v9  ;;  %v619_v12 = vpop.permute.xlu1 %618 }
 0x233   :  { %3138 = vmatprep.subr.msk.mxu1 %vm722_vm1, %v621_v63 }
 0x234   :  { %v613_v24 = vpop.permute.xlu0 %612 }
 0x236   :  { %3139 = vmatpush3.xpose.msk.msra.mxu1 %vm722_vm1, %v621_v63  ;;  %v611_v23 = vpop.permute.xlu1 %610 }
 0x237   :  { %3140 = vmatprep.subr.msk.mxu1 %vm722_vm1, %v619_v12 }
 0x238   :  { %v609_v13 = vpop.permute.xlu0 %608 }
 0x23a   :  { %3141 = vmatpush3.xpose.msk.msra.mxu1 %vm722_vm1, %v619_v12  ;;  %v607_v14 = vpop.permute.xlu1 %606 }
 0x23b   :  { %3142 = vmatprep.subr.msk.mxu1 %vm722_vm1, %v613_v24 }
 0x23c   :  { %v601_v16 = vpop.permute.xlu0 %600 }
 0x23e   :  { %3143 = vmatpush3.xpose.msk.msra.mxu1 %vm722_vm1, %v613_v24  ;;  %v599_v17 = vpop.permute.xlu1 %598 }
 0x23f   :  { %3144 = vmatprep.subr.msk.mxu1 %vm722_vm1, %v611_v23 }
 0x240   :  { %v597_v22 = vpop.permute.xlu0 %596 }
 0x242   :  { %3145 = vmatpush3.xpose.msk.msra.mxu1 %vm722_vm1, %v611_v23  ;;  %v595_v25 = vpop.permute.xlu1 %594 }
 0x243   :  { %3146 = vmatprep.subr.msk.mxu1 %vm722_vm1, %v609_v13 }
 0x244   :  { %v3438_v41 = vpop.permute.xlu0 %3437 }
 0x245   :  { %v3440_v43 = vunpack.i.h.bf16 %v3438_v41  ;;  %v3439_v44 = vunpack.i.l.bf16 %v3438_v41 }
 0x246   :  { %3147 = vmatpush3.xpose.msk.msra.mxu1 %vm722_vm1, %v609_v13 }
 0x247   :  { %3148 = vmatprep.subr.msk.mxu1 %vm722_vm1, %v607_v14  ;;  %v716_v49 = vpack.c.bf16 %v3440_v43, %v3439_v44 }
 0x248   :  { %v3448_v12 = vpop.permute.xlu0 %3447 }
 0x249   :  { %v3450_v23 = vunpack.i.h.bf16 %v3448_v12  ;;  %v3449_v13 = vunpack.i.l.bf16 %v3448_v12 }
 0x24a   :  { %3149 = vmatpush3.xpose.msk.msra.mxu1 %vm722_vm1, %v607_v14 }
 0x24b   :  { %3150 = vmatprep.subr.msk.mxu1 %vm722_vm1, %v601_v16 }
 0x24e   :  { %3151 = vmatpush3.xpose.msk.msra.mxu1 %vm722_vm1, %v601_v16  ;;  %v3458_v16 = vpop.permute.xlu0 %3457 }
 0x24f   :  { %3152 = vmatprep.subr.msk.mxu1 %vm722_vm1, %v599_v17  ;;  %v3460_v33 = vunpack.i.h.bf16 %v3458_v16 }
 0x252   :  { %3153 = vmatpush3.xpose.msk.msra.mxu1 %vm722_vm1, %v599_v17 }
 0x253   :  { %3154 = vmatprep.subr.msk.mxu1 %vm722_vm1, %v597_v22 }
 0x256   :  { %3155 = vmatpush3.xpose.msk.msra.mxu1 %vm722_vm1, %v597_v22 }
 0x257   :  { %3156 = vmatprep.subr.msk.mxu1 %vm722_vm1, %v595_v25 }
 0x25a   :  { %3157 = vmatpush3.xpose.msk.msra.mxu1 %vm722_vm1, %v595_v25 }
 0x25b   :  { %3158 = vmatprep.subr.msk.mxu1 %vm722_vm1, %v3931_v60 }
 0x25e   :  { %3159 = vmatpush3.xpose.msk.msra.mxu1 %vm722_vm1, %v3931_v60  ;;  %v3093_v60 = vpop.f32.mrf.mxu0 }
 0x25f   :  { %3160 = vmatprep.subr.msk.mxu1 %vm722_vm1, %v3917_v51  ;;  %v341_v47 = vadd.f32 %v3093_v60, %v3909_v39  ;;  %v3459_v60 = vunpack.i.l.bf16 %v3458_v16 }
 0x262   :  { %3161 = vmatpush3.xpose.msk.msra.mxu1 %vm722_vm1, %v3917_v51  ;;  %v4089_v51 = vpop.f32.mrf.mxu0 }
 0x263   :  { %3162 = vmatprep.subr.msk.mxu1 %vm722_vm1, %v3933_v61 }
 0x264   :  { %v4098_v3 = vpop.f32.mrf.mxu0 }
 0x266   :  { %3163 = vmatpush3.xpose.msk.msra.mxu1 %vm722_vm1, %v3933_v61  ;;  %v4096_v61 = vpack.c.bf16 %v341_v47, %v338_v45  ;;  %v4110_v62 = vpop.f32.mrf.mxu0  ;;  %v720_v47 = vpack.c.bf16 %v3460_v33, %v3459_v60  ;;  %v4148_v60 = vld [vmem:[%s4887_s6] ss:$0 sm:$0xff] }
 0x267   :  { %3164 = vmatprep.subr.msk.mxu1 %vm722_vm1, %v3919_v54 }
 0x268   :  { %4912 = vst [vmem:[#allocation12_spill] sm:$0xff] %v4096_v61  ;;  %v4114_v24 = vpop.f32.mrf.mxu0 }
 0x26a   :  { %3165 = vmatpush3.xpose.msk.msra.mxu1 %vm722_vm1, %v3919_v54  ;;  %v3443_v54 = vpop.permute.xlu1 %3442  ;;  %v4117_v14 = vpop.f32.mrf.mxu0 }
 0x26b   :  { %3417 = vmatprep.subr.msk.bf16.mxu1 %vm1260_vm2, %v4092_v48  ;;  %v3445_v63 = vunpack.i.h.bf16 %v3443_v54  ;;  %v3444_v9 = vunpack.i.l.bf16 %v3443_v54 }
 0x26c   :  { %v4119_v18 = vpop.f32.mrf.mxu0 }
 0x26d   :  { %3167 = vmatmul.mubr.msk.bf16.vlgmr.msra.gmra.mxu1 %vm722_vm1, %v715_v21  ;;  %v717_v15 = vpack.c.bf16 %v3445_v63, %v3444_v9  ;;  %v718_v21 = vpack.c.bf16 %v3450_v23, %v3449_v13 }
 0x26e   :  { %3170 = vmatprep.mubr.msk.bf16.mxu1 %vm722_vm1, %v716_v49  ;;  %3249 = vmatpush3.bf16.msra.mxu1 %v4104_v7  ;;  %v4122_v17 = vpop.f32.mrf.mxu0  ;;  %v3453_v22 = vpop.permute.xlu1 %3452 }
 0x26f   :  { %3274 = vmatprep.subr.bf16.mxu1 %v4096_v61  ;;  %v3455_v25 = vunpack.i.h.bf16 %v3453_v22  ;;  %v3454_v26 = vunpack.i.l.bf16 %v3453_v22 }
 0x270   :  { %v4125_v31 = vpop.f32.mrf.mxu0 }
 0x271   :  { %v719_v43 = vpack.c.bf16 %v3455_v25, %v3454_v26 }
 0x272   :  { %v4127_v41 = vpop.f32.mrf.mxu0  ;;  %v3463_v45 = vpop.permute.xlu1 %3462 }
 0x273   :  { %v3465_v54 = vunpack.i.h.bf16 %v3463_v45  ;;  %v3464_v63 = vunpack.i.l.bf16 %v3463_v45 }
 0x274   :  { %v4129_v44 = vpop.f32.mrf.mxu0 }
 0x275   :  { %3171 = vmatmul.mubr.msk.bf16.gmra.mxu1 %vm722_vm1, %v717_v15  ;;  %v721_v23 = vpack.c.bf16 %v3465_v54, %v3464_v63 }
 0x276   :  { %3174 = vmatprep.mubr.msk.bf16.mxu1 %vm722_vm1, %v718_v21  ;;  %v4132_v49 = vpop.f32.mrf.mxu0 }
 0x278   :  { %v4135_v9 = vpop.f32.mrf.mxu0 }
 0x27a   :  { %v4137_v12 = vpop.f32.mrf.mxu0 }
 0x27c   :  { %v3132_v13 = vpop.f32.mrf.mxu0 }
 0x27d   :  { %3175 = vmatmul.mubr.msk.bf16.gmra.mxu1 %vm722_vm1, %v719_v43  ;;  %666 = vrot.lane.b32.xlu0 %v3132_v13, %s3653_s12 }
 0x27e   :  { %3178 = vmatprep.mubr.msk.bf16.mxu1 %vm722_vm1, %v720_v47  ;;  %v4141_v15 = vpop.f32.mrf.mxu0 }
 0x280   :  { %v3133_v21 = vpop.f32.mrf.mxu0 }
 0x281   :  { %668 = vrot.lane.b32.xlu1 %v3133_v21, %s3653_s12 }
 0x282   :  { %v578_v16 = vpop.f32.mrf.mxu0 }
 0x285   :  { %3179 = vmatmul.mubr.msk.bf16.gmra.mxu1 %vm722_vm1, %v721_v23  ;;  %664 = vrot.lane.b32.xlu1 %v578_v16, %s3653_s12 }
 0x2ef   :  { %v667_v25 = vpop.permute.xlu0 %666 }
 0x2f3   :  { %v669_v22 = vpop.permute.xlu1 %668 }
 0x2f4   :  { %3182 = vmatprep.subr.mxu0 %v669_v22 }
 0x2f5   :  { %3183 = vmatpush3.msra.mxu0 %v669_v22 }
 0x2f6   :  { %3184 = vmatprep.subr.mxu0 %v667_v25 }
 0x2f7   :  { %v665_v26 = vpop.permute.xlu1 %664  ;;  %3185 = vmatpush3.msra.mxu0 %v667_v25 }
 0x2f8   :  { %3186 = vmatprep.subr.mxu0 %v665_v26 }
 0x2f9   :  { %3187 = vmatpush3.msra.mxu0 %v665_v26 }
 0x32d   :  { %v3168_v33 = vpop.f32.mrf.mxu1 }
 0x32e   :  { %v914_v43 = vmul.f32 0.35355338, %v3168_v33 }
 0x32f   :  { %v849_v45 = vpop.f32.mrf.mxu1 }
 0x330   :  { %v912_v47 = vmul.f32 0.35355338, %v849_v45  ;;  %v935_v54 = vadd.f32 %v4148_v60, %v914_v43 }
 0x331   :  { %v3169_v63 = vpop.f32.mrf.mxu1 }
 0x332   :  { %953 = vmax.xlane.f32.xlu0 %v935_v54  ;;  %v915_v13 = vmul.f32 0.35355338, %v3169_v63  ;;  %v933_v16 = vadd.f32 %v4148_v60, %v912_v47 }
 0x333   :  { %v852_v23 = vpop.f32.mrf.mxu1 }
 0x334   :  { %v913_v21 = vmul.f32 0.35355338, %v852_v23  ;;  %v936_v33 = vadd.f32 %v4148_v60, %v915_v13 }
 0x335   :  { %v3172_v22 = vpop.f32.mrf.mxu1 }
 0x336   :  { %v918_v25 = vmul.f32 0.35355338, %v3172_v22  ;;  %949 = vmax.xlane.f32.xlu0 %v933_v16  ;;  %v934_v26 = vadd.f32 %v4148_v60, %v913_v21 }
 0x337   :  { %v865_v35 = vpop.f32.mrf.mxu1 }
 0x338   :  { %951 = vmax.xlane.f32.xlu1 %v934_v26  ;;  %v916_v45 = vmul.f32 0.35355338, %v865_v35  ;;  %v939_v43 = vadd.f32 %v4148_v60, %v918_v25 }
 0x339   :  { %v3173_v55 = vpop.f32.mrf.mxu1 }
 0x33a   :  { %v919_v7 = vmul.f32 0.35355338, %v3173_v55  ;;  %955 = vmax.xlane.f32.xlu0 %v936_v33  ;;  %v937_v21 = vadd.f32 %v4148_v60, %v916_v45 }
 0x33b   :  { %v868_v48 = vpop.f32.mrf.mxu1 }
 0x33c   :  { %v917_v63 = vmul.f32 0.35355338, %v868_v48  ;;  %961 = vmax.xlane.f32.xlu1 %v939_v43  ;;  %v940_v47 = vadd.f32 %v4148_v60, %v919_v7 }
 0x33d   :  { %v3176_v23 = vpop.f32.mrf.mxu1 }
 0x33e   :  { %v922_v22 = vmul.f32 0.35355338, %v3176_v23  ;;  %963 = vmax.xlane.f32.xlu0 %v940_v47  ;;  %v938_v13 = vadd.f32 %v4148_v60, %v917_v63 }
 0x33f   :  { %v881_v34 = vpop.f32.mrf.mxu1 }
 0x340   :  { %957 = vmax.xlane.f32.xlu1 %v937_v21  ;;  %v920_v35 = vmul.f32 0.35355338, %v881_v34  ;;  %v4159_v25 = vadd.f32 %v4148_v60, %v922_v22 }
 0x341   :  { %v3177_v8 = vpop.f32.mrf.mxu1 }
 0x342   :  { %v923_v55 = vmul.f32 0.35355338, %v3177_v8  ;;  %959 = vmax.xlane.f32.xlu0 %v938_v13  ;;  %v4167_v45 = vadd.f32 %v4148_v60, %v920_v35 }
 0x343   :  { %v884_v48 = vpop.f32.mrf.mxu1 }
 0x344   :  { %v921_v2 = vmul.f32 0.35355338, %v884_v48  ;;  %969 = vmax.xlane.f32.xlu1 %v4159_v25  ;;  %v4163_v7 = vadd.f32 %v4148_v60, %v923_v55 }
 0x346   :  { %971 = vmax.xlane.f32.xlu0 %v4163_v7  ;;  %v4171_v34 = vadd.f32 %v4148_v60, %v921_v2 }
 0x348   :  { %965 = vmax.xlane.f32.xlu1 %v4167_v45 }
 0x34a   :  { %967 = vmax.xlane.f32.xlu0 %v4171_v34 }
 0x359   :  { %652 = vrot.lane.b32.xlu1 %v4135_v9, %s3654_s20 }
 0x35d   :  { %650 = vrot.lane.b32.xlu1 %v4129_v44, %s3654_s20 }
 0x360   :  { %662 = vrot.lane.b32.xlu0 %v4141_v15, %s3653_s12 }
 0x3bb   :  { %v954_v8 = vpop.xlane.xlu0 %953 }
 0x3bc   :  { %v983_v63 = vsub.f32 %v935_v54, %v954_v8 }
 0x3be   :  { %v1001_v23 = vmul.f32 1.442695, %v983_v63 }
 0x3bf   :  { %v950_v22 = vpop.xlane.xlu0 %949 }
 0x3c0   :  { %3496 = vpow2.f32 %v1001_v23  ;;  %v981_v35 = vsub.f32 %v933_v16, %v950_v22 }
 0x3c1   :  { %v952_v55 = vpop.xlane.xlu1 %951 }
 0x3c2   :  { %v997_v2 = vmul.f32 1.442695, %v981_v35  ;;  %v982_v46 = vsub.f32 %v934_v26, %v952_v55 }
 0x3c3   :  { %v956_v48 = vpop.xlane.xlu0 %955 }
 0x3c4   :  { %3498 = vpow2.f32 %v997_v2  ;;  %v984_v42 = vsub.f32 %v936_v33, %v956_v48  ;;  %v999_v11 = vmul.f32 1.442695, %v982_v46  ;;  %v2769_v2 = vmul.f32 -1.442695, %v3797_v36 }
 0x3c5   :  { %v962_v28 = vpop.xlane.xlu1 %961 }
 0x3c6   :  { %v1003_v9 = vmul.f32 1.442695, %v984_v42  ;;  %v987_v44 = vsub.f32 %v939_v43, %v962_v28 }
 0x3c7   :  { %v964_v19 = vpop.xlane.xlu0 %963 }
 0x3c8   :  { %3500 = vpow2.f32 %v1003_v9  ;;  %v1009_v54 = vmul.f32 1.442695, %v987_v44  ;;  %v988_v8 = vsub.f32 %v940_v47, %v964_v19 }
 0x3c9   :  { %v958_v5 = vpop.xlane.xlu1 %957  ;;  %3502 = vpow2.f32 %v999_v11 }
 0x3ca   :  { %v985_v15 = vsub.f32 %v937_v21, %v958_v5  ;;  %v1011_v42 = vmul.f32 1.442695, %v988_v8 }
 0x3cb   :  { %v960_v61 = vpop.xlane.xlu0 %959 }
 0x3cc   :  { %v1005_v63 = vmul.f32 1.442695, %v985_v15  ;;  %v986_v33 = vsub.f32 %v938_v13, %v960_v61 }
 0x3cd   :  { %v4180_v16 = vpop.eup %3496  ;;  %v970_v23 = vpop.xlane.xlu1 %969 }
 0x3ce   :  { %3504 = vpow2.f32 %v1005_v63  ;;  %1033 = vadd.xlane.f32.xlu1 %v4180_v16  ;;  %v1007_v11 = vmul.f32 1.442695, %v986_v33 }
 0x3cf   :  { %v972_v26 = vpop.xlane.xlu0 %971  ;;  %3506 = vpow2.f32 %v1009_v54  ;;  %v3180_v54 = vpop.f32.mrf.mxu1 }
 0x3d0   :  { %3508 = vpow2.f32 %v1011_v42  ;;  %v992_v36 = vsub.f32 %v4163_v7, %v972_v26 }
 0x3d1   :  { %v4183_v46 = vpop.eup %3498  ;;  %v966_v28 = vpop.xlane.xlu1 %965  ;;  %3510 = vpow2.f32 %v1007_v11 }
 0x3d2   :  { %1029 = vadd.xlane.f32.xlu0 %v4183_v46  ;;  %3512 = vpow2.f32 %v2769_v2 }
 0x3d3   :  { %v968_v5 = vpop.xlane.xlu0 %967 }
 0x3d5   :  { %v4186_v19 = vpop.eup %3500  ;;  %v653_v43 = vpop.permute.xlu1 %652 }
 0x3d6   :  { %1035 = vadd.xlane.f32.xlu0 %v4186_v19  ;;  %v4189_v21 = vpop.eup %3502 }
 0x3d7   :  { %v663_v47 = vpop.permute.xlu0 %662 }
 0x3d8   :  { %3188 = vmatprep.subr.mxu0 %v663_v47 }
 0x3d9   :  { %3189 = vmatpush3.msra.mxu0 %v663_v47  ;;  %v651_v13 = vpop.permute.xlu1 %650 }
 0x3da   :  { %1031 = vadd.xlane.f32.xlu0 %v4189_v21  ;;  %3190 = vmatprep.subr.mxu0 %v653_v43 }
 0x3db   :  { %v4192_v61 = vpop.eup %3504  ;;  %3191 = vmatpush3.msra.mxu0 %v653_v43 }
 0x3dc   :  { %1037 = vadd.xlane.f32.xlu1 %v4192_v61  ;;  %3192 = vmatprep.subr.mxu0 %v651_v13  ;;  %v4195_v22 = vpop.eup %3506 }
 0x3dd   :  { %3193 = vmatpush3.msra.mxu0 %v651_v13  ;;  %v4198_v35 = vpop.eup %3508 }
 0x3de   :  { %1041 = vadd.xlane.f32.xlu0 %v4195_v22  ;;  %v4201_v55 = vpop.eup %3510 }
 0x3df   :  { %v3513_v9 = vpop.eup %3512 }
 0x3e0   :  { %v45_v44 = vadd.f32 1.0, %v3513_v9 }
 0x3e2   :  { %1043 = vadd.xlane.f32.xlu0 %v4198_v35 }
 0x3e6   :  { %1039 = vadd.xlane.f32.xlu0 %v4201_v55 }
 0x3ed   :  { %646 = vrot.lane.b32.xlu1 %v4132_v49, %s3654_s20  ;;  %v989_v49 = vsub.f32 %v4167_v45, %v966_v28  ;;  %v926_v28 = vmul.f32 0.35355338, %v3180_v54 }
 0x3ef   :  { %v1013_v48 = vmul.f32 1.442695, %v989_v49  ;;  %v4245_v47 = vadd.f32 %v4148_v60, %v926_v28 }
 0x3f1   :  { %636 = vrot.lane.b32.xlu1 %v4125_v31, %s3655_s21  ;;  %v991_v31 = vsub.f32 %v4159_v25, %v970_v23  ;;  %3514 = vpow2.f32 %v1013_v48 }
 0x3f2   :  { %3516 = vrcp.f32 %v45_v44 }
 0x3f5   :  { %634 = vrot.lane.b32.xlu1 %v4119_v18, %s3655_s21  ;;  %v990_v18 = vsub.f32 %v4171_v34, %v968_v5 }
 0x3f7   :  { %v1015_v15 = vmul.f32 1.442695, %v990_v18 }
 0x3f9   :  { %632 = vrot.lane.b32.xlu1 %v4127_v41, %s3655_s21  ;;  %v1017_v41 = vmul.f32 1.442695, %v991_v31 }
 0x3fb   :  { %3518 = vpow2.f32 %v1017_v41 }
 0x3fc   :  { %648 = vrot.lane.b32.xlu0 %v4137_v12, %s3654_s20  ;;  %v1019_v12 = vmul.f32 1.442695, %v992_v36  ;;  %3520 = vpow2.f32 %v1015_v15 }
 0x3fd   :  { %630 = vrot.lane.b32.xlu1 %v4122_v17, %s3655_s21  ;;  %v897_v17 = vpop.f32.mrf.mxu1 }
 0x3fe   :  { %3522 = vpow2.f32 %v1019_v12  ;;  %v4221_v45 = vpop.eup %3514  ;;  %v924_v23 = vmul.f32 0.35355338, %v897_v17 }
 0x3ff   :  { %v3517_v8 = vpop.eup %3516  ;;  %v3181_v25 = vpop.f32.mrf.mxu1 }
 0x400   :  { %v4224_v34 = vrot.slane %v3517_v8, 6  ;;  %v4237_v5 = vadd.f32 %v4148_v60, %v924_v23  ;;  %v927_v11 = vmul.f32 0.35355338, %v3181_v25 }
 0x401   :  { %v900_v7 = vpop.f32.mrf.mxu1 }
 0x402   :  { %3422 = vpush %v4224_v34  ;;  %v925_v42 = vmul.f32 0.35355338, %v900_v7  ;;  %v4249_v13 = vadd.f32 %v4148_v60, %v927_v11 }
 0x404   :  { %v4241_v43 = vadd.f32 %v4148_v60, %v925_v42 }
 0x408   :  { %v4227_v63 = vpop.eup %3518 }
 0x409   :  { %v4230_v26 = vpop.eup %3520 }
 0x40b   :  { %v4233_v33 = vpop.eup %3522 }
 0x41b   :  { %1045 = vadd.xlane.f32.xlu0 %v4221_v45 }
 0x41f   :  { %1049 = vadd.xlane.f32.xlu0 %v4227_v63 }
 0x421   :  { %1047 = vadd.xlane.f32.xlu1 %v4230_v26 }
 0x423   :  { %1051 = vadd.xlane.f32.xlu0 %v4233_v33 }
 0x425   :  { %973 = vmax.xlane.f32.xlu1 %v4237_v5 }
 0x427   :  { %975 = vmax.xlane.f32.xlu0 %v4241_v43 }
 0x429   :  { %977 = vmax.xlane.f32.xlu1 %v4245_v47 }
 0x42b   :  { %979 = vmax.xlane.f32.xlu0 %v4249_v13 }
 0x43a   :  { %1241 = vrot.lane.b32.xlu1 %v4224_v34, %s3656_s26 }
 0x441   :  { %1371 = vrot.lane.b32.xlu0 %v4224_v34, %s3657_s27 }
 0x457   :  { %v1034_v48 = vpop.xlane.xlu1 %1033 }
 0x45b   :  { %v1030_v2 = vpop.xlane.xlu0 %1029 }
 0x45c   :  { %3524 = vrcp.f32 %v1030_v2 }
 0x45f   :  { %v1036_v49 = vpop.xlane.xlu0 %1035 }
 0x463   :  { %v1032_v31 = vpop.xlane.xlu0 %1031 }
 0x464   :  { %3526 = vrcp.f32 %v1032_v31 }
 0x465   :  { %v1038_v9 = vpop.xlane.xlu1 %1037  ;;  %3528 = vrcp.f32 %v1036_v49 }
 0x467   :  { %v1042_v18 = vpop.xlane.xlu0 %1041 }
 0x469   :  { %v647_v44 = vpop.permute.xlu1 %646  ;;  %v3525_v36 = vpop.eup %3524 }
 0x46a   :  { %v1077_v17 = vmul.f32 %v3525_v36, %v4183_v46 }
 0x46b   :  { %v1044_v41 = vpop.xlane.xlu0 %1043 }
 0x46d   :  { %v637_v60 = vpop.permute.xlu1 %636 }
 0x46f   :  { %v1040_v15 = vpop.xlane.xlu0 %1039 }
 0x470   :  { %3530 = vrcp.f32 %v1040_v15 }
 0x471   :  { %v3527_v12 = vpop.eup %3526  ;;  %v635_v54 = vpop.permute.xlu1 %634  ;;  %3532 = vrcp.f32 %v1034_v48 }
 0x472   :  { %v1078_v8 = vmul.f32 %v3527_v12, %v4189_v21  ;;  %3534 = vrcp.f32 %v1038_v9  ;;  %v3529_v21 = vpop.eup %3528 }
 0x473   :  { %v649_v25 = vpop.permute.xlu0 %648  ;;  %3536 = vrcp.f32 %v1044_v41  ;;  %v1080_v2 = vmul.f32 %v3529_v21, %v4186_v19 }
 0x474   :  { %3194 = vmatprep.subr.mxu0 %v649_v25  ;;  %v1093_v7 = vpack.c.bf16 %v1078_v8, %v1077_v17  ;;  %3538 = vrcp.f32 %v1042_v18 }
 0x475   :  { %3195 = vmatpush3.msra.mxu0 %v649_v25  ;;  %v633_v23 = vpop.permute.xlu1 %632 }
 0x476   :  { %3196 = vmatprep.subr.mxu0 %v647_v44  ;;  %3214 = vmatprep.mubr.bf16.mxu0 %v1093_v7 }
 0x477   :  { %3197 = vmatpush3.msra.mxu0 %v647_v44 }
 0x478   :  { %3198 = vmatprep.subr.mxu0 %v637_v60 }
 0x479   :  { %3199 = vmatpush3.msra.mxu0 %v637_v60  ;;  %v631_v46 = vpop.permute.xlu1 %630 }
 0x47a   :  { %3200 = vmatprep.subr.mxu0 %v635_v54 }
 0x47b   :  { %3201 = vmatpush3.msra.mxu0 %v635_v54 }
 0x47c   :  { %3202 = vmatprep.subr.mxu0 %v633_v23 }
 0x47d   :  { %3203 = vmatpush3.msra.mxu0 %v633_v23  ;;  %v3531_v42 = vpop.eup %3530 }
 0x47e   :  { %3204 = vmatprep.subr.mxu0 %v631_v46  ;;  %v3533_v28 = vpop.eup %3532  ;;  %v1082_v49 = vmul.f32 %v3531_v42, %v4201_v55 }
 0x47f   :  { %3205 = vmatpush3.msra.mxu0 %v631_v46  ;;  %v3535_v11 = vpop.eup %3534  ;;  %v1079_v48 = vmul.f32 %v3533_v28, %v4180_v16 }
 0x480   :  { %3206 = vmatprep.subr.mxu0 %v4114_v24  ;;  %v1081_v31 = vmul.f32 %v3535_v11, %v4192_v61  ;;  %v3537_v9 = vpop.eup %3536 }
 0x481   :  { %3207 = vmatpush3.msra.mxu0 %v4114_v24  ;;  %v1094_v24 = vpack.c.bf16 %v1080_v2, %v1079_v48  ;;  %v3539_v19 = vpop.eup %3538 }
 0x482   :  { %3208 = vmatprep.subr.mxu0 %v4098_v3  ;;  %v1095_v18 = vpack.c.bf16 %v1082_v49, %v1081_v31  ;;  %v1083_v55 = vmul.f32 %v3539_v19, %v4195_v22 }
 0x483   :  { %3209 = vmatpush3.msra.mxu0 %v4098_v3  ;;  %v1084_v3 = vmul.f32 %v3537_v9, %v4198_v35 }
 0x484   :  { %3210 = vmatprep.subr.mxu0 %v4117_v14 }
 0x485   :  { %3211 = vmatpush3.msra.mxu0 %v4117_v14  ;;  %v1096_v44 = vpack.c.bf16 %v1084_v3, %v1083_v55 }
 0x486   :  { %3212 = vmatprep.subr.mxu0 %v4110_v62 }
 0x487   :  { %3213 = vmatpush3.msra.mxu0 %v4110_v62 }
 0x488   :  { %3215 = vmatmul.mubr.bf16.vlgmr.msra.gmra.mxu0 %v1094_v24 }
 0x489   :  { %3218 = vmatprep.mubr.bf16.mxu0 %v1095_v18 }
 0x490   :  { %3219 = vmatmul.mubr.bf16.gmra.mxu0 %v1096_v44 }
 0x4a4   :  { %v1046_v16 = vpop.xlane.xlu0 %1045 }
 0x4a5   :  { %3540 = vrcp.f32 %v1046_v16 }
 0x4a8   :  { %v1050_v14 = vpop.xlane.xlu0 %1049 }
 0x4a9   :  { %3542 = vrcp.f32 %v1050_v14 }
 0x4aa   :  { %v1048_v61 = vpop.xlane.xlu1 %1047 }
 0x4ab   :  { %3544 = vrcp.f32 %v1048_v61 }
 0x4ac   :  { %v1052_v41 = vpop.xlane.xlu0 %1051 }
 0x4ad   :  { %3546 = vrcp.f32 %v1052_v41 }
 0x4ae   :  { %v974_v60 = vpop.xlane.xlu1 %973 }
 0x4af   :  { %v993_v62 = vsub.f32 %v4237_v5, %v974_v60 }
 0x4b0   :  { %v976_v36 = vpop.xlane.xlu0 %975 }
 0x4b1   :  { %v1021_v15 = vmul.f32 1.442695, %v993_v62  ;;  %v994_v12 = vsub.f32 %v4241_v43, %v976_v36 }
 0x4b2   :  { %v978_v35 = vpop.xlane.xlu1 %977  ;;  %v3541_v7 = vpop.eup %3540 }
 0x4b3   :  { %3548 = vpow2.f32 %v1021_v15  ;;  %v1023_v22 = vmul.f32 1.442695, %v994_v12  ;;  %v995_v54 = vsub.f32 %v4245_v47, %v978_v35  ;;  %v1085_v43 = vmul.f32 %v3541_v7, %v4221_v45  ;;  %v70_v45 = vld [vmem:[%s4886_s8] sm:$0xff] }
 0x4b4   :  { %v980_v17 = vpop.xlane.xlu0 %979 }
 0x4b5   :  { %3550 = vpow2.f32 %v1023_v22  ;;  %v1025_v8 = vmul.f32 1.442695, %v995_v54  ;;  %v996_v25 = vsub.f32 %v4249_v13, %v980_v17 }
 0x4b6   :  { %v1242_v23 = vpop.permute.xlu1 %1241  ;;  %v3543_v46 = vpop.eup %3542 }
 0x4b7   :  { %3552 = vpow2.f32 %v1025_v8  ;;  %v1027_v21 = vmul.f32 1.442695, %v996_v25  ;;  %3424 = vpush %v1242_v23  ;;  %v1087_v2 = vmul.f32 %v3543_v46, %v4227_v63  ;;  %v71_v63 = vld [vmem:[%s4886_s8 + $0x8] sm:$0xff]  ;;  %s3423_s8 = spop %3422 }
 0x4b8   :  { %v3545_v5 = vpop.eup %3544  ;;  %v1372_v42 = vpop.permute.xlu0 %1371 }
 0x4b9   :  { %3554 = vpow2.f32 %v1027_v21  ;;  %v1086_v28 = vmul.f32 %v3545_v5, %v4230_v26  ;;  %3426 = vpush %v1372_v42  ;;  %v4284_v26 = vpack.c.bf16 %v71_v63, %v70_v45  ;;  %v4322_v63 = vsel %vm1260_vm2, %v4081_v40, 0 }
 0x4ba   :  { %v3547_v47 = vpop.eup %3546 }
 0x4bb   :  { %v1097_v11 = vpack.c.bf16 %v1086_v28, %v1085_v43  ;;  %v1088_v13 = vmul.f32 %v3547_v47, %v4233_v33  ;;  %v4287_v33 = vrot.slane %v4284_v26, 4  ;;  %v4303_v28 = vstv %s3423_s8 }
 0x4bd   :  { %3222 = vmatprep.mubr.bf16.mxu0 %v1097_v11  ;;  %v1098_v49 = vpack.c.bf16 %v1088_v13, %v1087_v2  ;;  %3414 = vmatprep.subr.msk.bf16.mxu0 %vm1260_vm2, %v4287_v33  ;;  %v4293_v18 = vsel %vm1260_vm2, %v4287_v33, 0 }
 0x4be   :  { %3231 = vmatpush3.bf16.msra.mxu0 %v4293_v18 }
 0x4bf   :  { %3223 = vmatmul.mubr.bf16.gmra.mxu0 %v1098_v49  ;;  %3415 = vmatprep.subr.msk.bf16.mxu0 %vm1260_vm2, %v4284_v26 }
 0x4c0   :  { %v3549_v48 = vpop.eup %3548 }
 0x4c1   :  { %1053 = vadd.xlane.f32.xlu1 %v3549_v48 }
 0x4c2   :  { %v3551_v31 = vpop.eup %3550 }
 0x4c3   :  { %1055 = vadd.xlane.f32.xlu0 %v3551_v31 }
 0x4c4   :  { %v3553_v24 = vpop.eup %3552 }
 0x4c5   :  { %1057 = vadd.xlane.f32.xlu1 %v3553_v24 }
 0x4c6   :  { %v3555_v9 = vpop.eup %3554 }
 0x4c7   :  { %1059 = vadd.xlane.f32.xlu0 %v3555_v9 }
 0x4e8   :  { %s3425_s30 = spop %3424 }
 0x4e9   :  { %v4298_v8 = vstv %s3425_s30 }
 0x4ea   :  { %s3427_s10 = spop %3426 }
 0x548   :  { %v3216_v19 = vpop.f32.mrf.mxu0 }
 0x54a   :  { %v1167_v3 = vpop.f32.mrf.mxu0  ;;  %v1054_v55 = vpop.xlane.xlu1 %1053 }
 0x54b   :  { %3556 = vrcp.f32 %v1054_v55  ;;  %v1235_v13 = vmul.f32 %v4303_v28, %v1167_v3 }
 0x54c   :  { %v3217_v44 = vpop.f32.mrf.mxu0  ;;  %v1056_v16 = vpop.xlane.xlu0 %1055 }
 0x54d   :  { %3558 = vrcp.f32 %v1056_v16  ;;  %v4327_v16 = vstv %s3427_s10 }
 0x54e   :  { %v1170_v14 = vpop.f32.mrf.mxu0  ;;  %v1058_v61 = vpop.xlane.xlu1 %1057 }
 0x54f   :  { %3560 = vrcp.f32 %v1058_v61  ;;  %v1236_v11 = vmul.f32 %v4303_v28, %v1170_v14 }
 0x550   :  { %v3220_v41 = vpop.f32.mrf.mxu0  ;;  %v1060_v60 = vpop.xlane.xlu0 %1059 }
 0x551   :  { %3562 = vrcp.f32 %v1060_v60  ;;  %v1248_v2 = vmul.f32 %v3220_v41, %v4298_v8  ;;  %v261_v60 = vadd.f32 %v3876_v6, %v3800_v38 }
 0x552   :  { %v1183_v62 = vpop.f32.mrf.mxu0 }
 0x553   :  { %v1246_v5 = vmul.f32 %v4298_v8, %v1183_v62  ;;  %v264_v62 = vadd.f32 %v3915_v50, %v3800_v38 }
 0x554   :  { %v3221_v36 = vpop.f32.mrf.mxu0 }
 0x555   :  { %v1249_v47 = vmul.f32 %v3221_v36, %v4298_v8 }
 0x556   :  { %v1186_v35 = vpop.f32.mrf.mxu0 }
 0x557   :  { %v1247_v23 = vmul.f32 %v4298_v8, %v1186_v35  ;;  %v1251_v49 = vpack.c.bf16 %v1249_v47, %v1248_v2  ;;  %v1519_v35 = vpack.c.bf16 %v264_v62, %v261_v60 }
 0x558   :  { %v3557_v15 = vpop.eup %3556 }
 0x559   :  { %v1089_v22 = vmul.f32 %v3557_v15, %v3549_v48  ;;  %v1250_v43 = vpack.c.bf16 %v1247_v23, %v1246_v5  ;;  %v4311_v48 = vsel %vm1260_vm2, %v4284_v26, 0 }
 0x55a   :  { %v3559_v12 = vpop.eup %3558 }
 0x55b   :  { %v1090_v54 = vmul.f32 %v3559_v12, %v3551_v31  ;;  %v1239_v31 = vpack.c.bf16 %v1236_v11, %v1235_v13 }
 0x55c   :  { %v3561_v17 = vpop.eup %3560 }
 0x55d   :  { %v1099_v25 = vpack.c.bf16 %v1090_v54, %v1089_v22  ;;  %v1091_v46 = vmul.f32 %v3561_v17, %v3553_v24  ;;  %v1238_v24 = vmul.f32 %v3217_v44, %v4303_v28 }
 0x55e   :  { %v3563_v7 = vpop.eup %3562 }
 0x55f   :  { %3226 = vmatprep.mubr.bf16.mxu0 %v1099_v25  ;;  %v1092_v21 = vmul.f32 %v3563_v7, %v3555_v9  ;;  %v1237_v9 = vmul.f32 %v3216_v19, %v4303_v28 }
 0x561   :  { %v1100_v42 = vpack.c.bf16 %v1092_v21, %v1091_v46  ;;  %v1240_v45 = vpack.c.bf16 %v1238_v24, %v1237_v9 }
 0x563   :  { %3227 = vmatmul.mubr.bf16.gmra.mxu0 %v1100_v42 }
 0x564   :  { %3232 = vmatprep.mubr.msk.bf16.mxu0 %vm722_vm1, %v1250_v43 }
 0x56b   :  { %3233 = vmatmul.mubr.msk.bf16.vlgmr.msra.gmra.mxu0 %vm722_vm1, %v1251_v49 }
 0x56c   :  { %3238 = vmatprep.mubr.msk.bf16.mxu0 %vm722_vm1, %v1239_v31  ;;  %3237 = vmatpush3.bf16.msra.mxu0 %v4311_v48 }
 0x56d   :  { %3416 = vmatprep.subr.msk.bf16.mxu0 %vm1260_vm2, %v4081_v40 }
 0x573   :  { %3239 = vmatmul.mubr.msk.bf16.vlgmr.msra.gmra.mxu0 %vm722_vm1, %v1240_v45 }
 0x574   :  { %3243 = vmatpush3.bf16.msra.mxu0 %v4322_v63 }
 0x575   :  { %3254 = vmatprep.subr.bf16.mxu0 %v3880_v10 }
 0x57f   :  { %v3224_v3 = vpop.f32.mrf.mxu0 }
 0x580   :  { %v1378_v36 = vmul.f32 %v3224_v3, %v4327_v16 }
 0x581   :  { %v1199_v55 = vpop.f32.mrf.mxu0 }
 0x582   :  { %v1376_v61 = vmul.f32 %v4327_v16, %v1199_v55 }
 0x583   :  { %v3225_v44 = vpop.f32.mrf.mxu0 }
 0x584   :  { %v1379_v14 = vmul.f32 %v3225_v44, %v4327_v16 }
 0x585   :  { %v1202_v19 = vpop.f32.mrf.mxu0 }
 0x586   :  { %v1377_v41 = vmul.f32 %v4327_v16, %v1202_v19  ;;  %v1381_v12 = vpack.c.bf16 %v1379_v14, %v1378_v36 }
 0x588   :  { %v1380_v15 = vpack.c.bf16 %v1377_v41, %v1376_v61 }
 0x58a   :  { %3244 = vmatprep.mubr.msk.bf16.mxu0 %vm722_vm1, %v1380_v15 }
 0x58b   :  { %3245 = vmatmul.mubr.msk.bf16.vlgmr.msra.gmra.mxu0 %vm722_vm1, %v1381_v12 }
 0x58c   :  { %3255 = vmatpush3.bf16.msra.mxu0 %v3880_v10  ;;  %3258 = vmatprep.mubr.msk.bf16.mxu0 %vm128_vm0, %v3756_v20  ;;  %v4914_v20 = vpack.c.bf16 %v3906_v37, %v3899_v29 }
 0x58d   :  { %3256 = vmatprep.subr.bf16.mxu0 %v1519_v35 }
 0x590   :  { %3257 = vmatpush3.bf16.msra.mxu0 %v1519_v35 }
 0x593   :  { %3259 = vmatmul.mubr.msk.bf16.vlgmr.msra.gmra.mxu0 %vm128_vm0, %v3818_v52 }
 0x594   :  { %3262 = vmatprep.mubr.msk.bf16.mxu0 %vm128_vm0, %v3820_v53 }
 0x59b   :  { %3263 = vmatmul.mubr.msk.bf16.gmra.mxu0 %vm128_vm0, %v3838_v58 }
 0x59c   :  { %3266 = vmatprep.mubr.msk.bf16.mxu0 %vm128_vm0, %v3840_v59 }
 0x5a3   :  { %3267 = vmatmul.mubr.msk.bf16.gmra.mxu0 %vm128_vm0, %v3858_v0 }
 0x5a4   :  { %3270 = vmatprep.mubr.msk.bf16.mxu0 %vm128_vm0, %v3860_v1 }
 0x5ab   :  { %3271 = vmatmul.mubr.msk.bf16.gmra.mxu0 %vm128_vm0, %v3872_v4 }
 0x5ac   :  { %3326 = vmatprep.mubr.msk.bf16.mxu0 %vm722_vm1, %v4914_v20 }
 0x623   :  { %v4360_v38 = vpop.f32.mrf.mxu0 }
 0x625   :  { %v4362_v52 = vpop.f32.mrf.mxu0 }
 0x627   :  { %v4364_v53 = vpop.f32.mrf.mxu0 }
 0x629   :  { %v4366_v58 = vpop.f32.mrf.mxu0 }
 0x62b   :  { %v3234_v59 = vpop.f32.mrf.mxu0 }
 0x62d   :  { %v1298_v0 = vpop.f32.mrf.mxu0 }
 0x62f   :  { %v3235_v6 = vpop.f32.mrf.mxu0 }
 0x631   :  { %v1301_v1 = vpop.f32.mrf.mxu0 }
 0x633   :  { %v3240_v10 = vpop.f32.mrf.mxu0 }
 0x634   :  { %v1365_v50 = vadd.f32 %v3240_v10, %v3234_v59 }
 0x635   :  { %v1356_v4 = vpop.f32.mrf.mxu0 }
 0x636   :  { %v1357_v22 = vadd.f32 %v1356_v4, %v1298_v0 }
 0x637   :  { %v3241_v54 = vpop.f32.mrf.mxu0 }
 0x638   :  { %v1368_v29 = vadd.f32 %v3241_v54, %v3235_v6 }
 0x639   :  { %v1359_v37 = vpop.f32.mrf.mxu0 }
 0x63a   :  { %v1360_v17 = vadd.f32 %v1359_v37, %v1301_v1 }
 0x64b   :  { %v3246_v25 = vpop.f32.mrf.mxu0 }
 0x64c   :  { %v4368_v7 = vadd.f32 %v3246_v25, %v1365_v50 }
 0x64d   :  { %v1425_v23 = vpop.f32.mrf.mxu0 }
 0x64e   :  { %v4370_v46 = vadd.f32 %v1425_v23, %v1357_v22 }
 0x64f   :  { %v3247_v21 = vpop.f32.mrf.mxu0 }
 0x650   :  { %v4372_v5 = vadd.f32 %v3247_v21, %v1368_v29  ;;  %v4915_v29 = vpack.c.bf16 %v3902_v32, %v3896_v27 }
 0x651   :  { %v1428_v42 = vpop.f32.mrf.mxu0 }
 0x652   :  { %v4374_v43 = vadd.f32 %v1428_v42, %v1360_v17 }
 0x653   :  { %v4376_v47 = vpop.f32.mrf.mxu0 }
 0x655   :  { %v4378_v11 = vpop.f32.mrf.mxu0 }
 0x657   :  { %v4380_v2 = vpop.f32.mrf.mxu0 }
 0x659   :  { %v4382_v13 = vpop.f32.mrf.mxu0 }
 0x65b   :  { %v3264_v49 = vpop.f32.mrf.mxu0 }
 0x65d   :  { %v1571_v31 = vpop.f32.mrf.mxu0 }
 0x65f   :  { %v3265_v24 = vpop.f32.mrf.mxu0 }
 0x661   :  { %v1574_v9 = vpop.f32.mrf.mxu0 }
 0x663   :  { %v3268_v45 = vpop.f32.mrf.mxu0 }
 0x665   :  { %v1587_v3 = vpop.f32.mrf.mxu0 }
 0x667   :  { %v3269_v55 = vpop.f32.mrf.mxu0 }
 0x669   :  { %v1590_v44 = vpop.f32.mrf.mxu0 }
 0x66b   :  { %v3272_v14 = vpop.f32.mrf.mxu0 }
 0x66c   :  { %1749 = vrot.lane.b32.xlu0 %v3272_v14, %s3653_s12  ;;  %v4918_v14 = vld [vmem:[#allocation4_spill] sm:$0xff] }
 0x66d   :  { %v1603_v19 = vpop.f32.mrf.mxu0 }
 0x66f   :  { %v3273_v61 = vpop.f32.mrf.mxu0 }
 0x670   :  { %1739 = vrot.lane.b32.xlu0 %v3269_v55, %s3654_s20  ;;  %1751 = vrot.lane.b32.xlu1 %v3273_v61, %s3653_s12 }
 0x671   :  { %v1606_v41 = vpop.f32.mrf.mxu0 }
 0x674   :  { %1735 = vrot.lane.b32.xlu0 %v1590_v44, %s3654_s20  ;;  %1747 = vrot.lane.b32.xlu1 %v1606_v41, %s3653_s12 }
 0x678   :  { %1727 = vrot.lane.b32.xlu0 %v3265_v24, %s3655_s21  ;;  %1745 = vrot.lane.b32.xlu1 %v1603_v19, %s3653_s12  ;;  %v4919_v19 = vld [vmem:[#allocation5_spill] sm:$0xff] }
 0x67c   :  { %1723 = vrot.lane.b32.xlu0 %v1574_v9, %s3655_s21  ;;  %1737 = vrot.lane.b32.xlu1 %v3268_v45, %s3654_s20 }
 0x680   :  { %1444 = vrot.lane.b32.xlu0 %v4224_v34, %s3658_s11  ;;  %1733 = vrot.lane.b32.xlu1 %v1587_v3, %s3654_s20 }
 0x684   :  { %3472 = vrot.lane.b32.xlu0 %v3925_v56, %s3655_s21  ;;  %1725 = vrot.lane.b32.xlu1 %v3264_v49, %s3655_s21 }
 0x688   :  { %3482 = vrot.lane.b32.xlu0 %v3925_v56, %s3654_s20  ;;  %1721 = vrot.lane.b32.xlu1 %v1571_v31, %s3655_s21 }
 0x68c   :  { %3492 = vrot.lane.b32.xlu0 %v3925_v56, %s3653_s12  ;;  %3467 = vrot.lane.b32.xlu1 %v3929_v57, %s3655_s21 }
 0x690   :  { %3477 = vrot.lane.b32.xlu1 %v3929_v57, %s3654_s20 }
 0x694   :  { %3487 = vrot.lane.b32.xlu1 %v3929_v57, %s3653_s12 }
 0x6de   :  { %v1750_v34 = vpop.permute.xlu0 %1749 }
 0x6e2   :  { %v1740_v60 = vpop.permute.xlu0 %1739  ;;  %v1752_v62 = vpop.permute.xlu1 %1751 }
 0x6e3   :  { %3294 = vmatprep.subr.msk.mxu0 %vm722_vm1, %v1752_v62 }
 0x6e4   :  { %3295 = vmatpush3.xpose.msk.msra.mxu0 %vm722_vm1, %v1752_v62  ;;  %v4921_v62 = vld [vmem:[#allocation7_spill] sm:$0xff] }
 0x6e5   :  { %3296 = vmatprep.subr.msk.mxu0 %vm722_vm1, %v1750_v34 }
 0x6e6   :  { %v1736_v36 = vpop.permute.xlu0 %1735  ;;  %v1748_v56 = vpop.permute.xlu1 %1747 }
 0x6e8   :  { %3297 = vmatpush3.xpose.msk.msra.mxu0 %vm722_vm1, %v1750_v34 }
 0x6e9   :  { %3298 = vmatprep.subr.msk.mxu0 %vm722_vm1, %v1748_v56 }
 0x6ea   :  { %v1728_v15 = vpop.permute.xlu0 %1727  ;;  %v1746_v12 = vpop.permute.xlu1 %1745 }
 0x6ec   :  { %3299 = vmatpush3.xpose.msk.msra.mxu0 %vm722_vm1, %v1748_v56  ;;  %v4923_v56 = vld [vmem:[#allocation9_spill] sm:$0xff] }
 0x6ed   :  { %3300 = vmatprep.subr.msk.mxu0 %vm722_vm1, %v1746_v12 }
 0x6ee   :  { %v1724_v57 = vpop.permute.xlu0 %1723  ;;  %v1738_v20 = vpop.permute.xlu1 %1737 }
 0x6f0   :  { %3301 = vmatpush3.xpose.msk.msra.mxu0 %vm722_vm1, %v1746_v12 }
 0x6f1   :  { %3302 = vmatprep.subr.msk.mxu0 %vm722_vm1, %v1740_v60 }
 0x6f2   :  { %v1445_v35 = vpop.permute.xlu0 %1444  ;;  %v1734_v59 = vpop.permute.xlu1 %1733 }
 0x6f3   :  { %3428 = vpush %v1445_v35 }
 0x6f4   :  { %3303 = vmatpush3.xpose.msk.msra.mxu0 %vm722_vm1, %v1740_v60  ;;  %v4920_v60 = vld [vmem:[#allocation6_spill] sm:$0xff] }
 0x6f5   :  { %3304 = vmatprep.subr.msk.mxu0 %vm722_vm1, %v1738_v20 }
 0x6f6   :  { %v1726_v0 = vpop.permute.xlu1 %1725  ;;  %v3473_v4 = vpop.permute.xlu0 %3472 }
 0x6f7   :  { %v3475_v37 = vunpack.i.h.bf16 %v3473_v4  ;;  %v3474_v17 = vunpack.i.l.bf16 %v3473_v4 }
 0x6f8   :  { %3305 = vmatpush3.xpose.msk.msra.mxu0 %vm722_vm1, %v1738_v20 }
 0x6f9   :  { %3306 = vmatprep.subr.msk.mxu0 %vm722_vm1, %v1736_v36  ;;  %v1844_v31 = vpack.c.bf16 %v3475_v37, %v3474_v17 }
 0x6fa   :  { %v1722_v6 = vpop.permute.xlu1 %1721  ;;  %v3483_v24 = vpop.permute.xlu0 %3482 }
 0x6fc   :  { %3307 = vmatpush3.xpose.msk.msra.mxu0 %vm722_vm1, %v1736_v36  ;;  %v4922_v36 = vld [vmem:[#allocation8_spill] sm:$0xff] }
 0x6fd   :  { %3308 = vmatprep.subr.msk.mxu0 %vm722_vm1, %v1734_v59 }
 0x6fe   :  { %v3468_v1 = vpop.permute.xlu1 %3467  ;;  %v3493_v55 = vpop.permute.xlu0 %3492 }
 0x6ff   :  { %v3470_v10 = vunpack.i.h.bf16 %v3468_v1  ;;  %v3469_v50 = vunpack.i.l.bf16 %v3468_v1  ;;  %v3495_v61 = vunpack.i.h.bf16 %v3493_v55  ;;  %v3494_v41 = vunpack.i.l.bf16 %v3493_v55 }
 0x700   :  { %3309 = vmatpush3.xpose.msk.msra.mxu0 %vm722_vm1, %v1734_v59 }
 0x701   :  { %3310 = vmatprep.subr.msk.mxu0 %vm722_vm1, %v1728_v15  ;;  %v1843_v22 = vpack.c.bf16 %v3470_v10, %v3469_v50  ;;  %v1848_v34 = vpack.c.bf16 %v3495_v61, %v3494_v41 }
 0x702   :  { %v3478_v54 = vpop.permute.xlu1 %3477 }
 0x703   :  { %v3480_v25 = vunpack.i.h.bf16 %v3478_v54  ;;  %v3479_v23 = vunpack.i.l.bf16 %v3478_v54 }
 0x704   :  { %3311 = vmatpush3.xpose.msk.msra.mxu0 %vm722_vm1, %v1728_v15  ;;  %v4924_v15 = vld [vmem:[#allocation10_spill] sm:$0xff] }
 0x705   :  { %3312 = vmatprep.subr.msk.mxu0 %vm722_vm1, %v1726_v0 }
 0x706   :  { %v3488_v9 = vpop.permute.xlu1 %3487 }
 0x707   :  { %v3489_v45 = vunpack.i.l.bf16 %v3488_v9 }
 0x708   :  { %3313 = vmatpush3.xpose.msk.msra.mxu0 %vm722_vm1, %v1726_v0 }
 0x709   :  { %3314 = vmatprep.subr.msk.mxu0 %vm722_vm1, %v1724_v57 }
 0x70c   :  { %3315 = vmatpush3.xpose.msk.msra.mxu0 %vm722_vm1, %v1724_v57 }
 0x70d   :  { %3316 = vmatprep.subr.msk.mxu0 %vm722_vm1, %v1722_v6 }
 0x710   :  { %3317 = vmatpush3.xpose.msk.msra.mxu0 %vm722_vm1, %v1722_v6 }
 0x711   :  { %3318 = vmatprep.subr.msk.mxu0 %vm722_vm1, %v4380_v2 }
 0x714   :  { %3319 = vmatpush3.xpose.msk.msra.mxu0 %vm722_vm1, %v4380_v2  ;;  %v333_v2 = vadd.f32 %v4089_v51, %v3909_v39  ;;  %v3490_v51 = vunpack.i.h.bf16 %v3488_v9 }
 0x715   :  { %3320 = vmatprep.subr.msk.mxu0 %vm722_vm1, %v4376_v47 }
 0x716   :  { %v1847_v44 = vpack.c.bf16 %v3490_v51, %v3489_v45 }
 0x718   :  { %3321 = vmatpush3.xpose.msk.msra.mxu0 %vm722_vm1, %v4376_v47 }
 0x719   :  { %3322 = vmatprep.subr.msk.mxu0 %vm722_vm1, %v4382_v13 }
 0x71c   :  { %3323 = vmatpush3.xpose.msk.msra.mxu0 %vm722_vm1, %v4382_v13 }
 0x71d   :  { %3324 = vmatprep.subr.msk.mxu0 %vm722_vm1, %v4378_v11 }
 0x720   :  { %3325 = vmatpush3.xpose.msk.msra.mxu0 %vm722_vm1, %v4378_v11  ;;  %v330_v11 = vadd.f32 %v4069_v30, %v3909_v39  ;;  %v3485_v30 = vunpack.i.h.bf16 %v3483_v24  ;;  %v4917_v39 = vld [vmem:[#allocation3_spill] sm:$0xff] }
 0x723   :  { %3327 = vmatmul.mubr.msk.bf16.vlgmr.msra.gmra.mxu0 %vm722_vm1, %v4915_v29 }
 0x724   :  { %s3429_s4 = spop %3428  ;;  %3330 = vmatprep.mubr.msk.bf16.mxu0 %vm722_vm1, %v1843_v22 }
 0x725   :  { %v4454_v21 = vstv %s3429_s4 }
 0x726   :  { %v1451_v42 = vmul.f32 %v4360_v38, %v4454_v21  ;;  %v1452_v47 = vmul.f32 %v4364_v53, %v4454_v21  ;;  %v1449_v27 = vmul.f32 %v4454_v21, %v4362_v52  ;;  %v1450_v32 = vmul.f32 %v4454_v21, %v4366_v58  ;;  %v4916_v52 = vld [vmem:[#allocation12_spill] sm:$0xff] }
 0x727   :  { %v1845_v38 = vpack.c.bf16 %v3480_v25, %v3479_v23  ;;  %v1618_v53 = vpack.c.bf16 %v333_v2, %v330_v11  ;;  %v3484_v58 = vunpack.i.l.bf16 %v3483_v24  ;;  %v4527_v24 = vld [vmem:[%s4887_s6 + $0x1] ss:$0 sm:$0xff] }
 0x728   :  { %v1453_v13 = vpack.c.bf16 %v1450_v32, %v1449_v27  ;;  %v1454_v49 = vpack.c.bf16 %v1452_v47, %v1451_v42 }
 0x729   :  { %v1846_v3 = vpack.c.bf16 %v3485_v30, %v3484_v58 }
 0x72a   :  { %3250 = vmatprep.mubr.msk.bf16.mxu1 %vm722_vm1, %v1453_v13 }
 0x72b   :  { %3251 = vmatmul.mubr.msk.bf16.vlgmr.msra.gmra.mxu1 %vm722_vm1, %v1454_v49  ;;  %3331 = vmatmul.mubr.msk.bf16.gmra.mxu0 %vm722_vm1, %v1844_v31 }
 0x72c   :  { %3275 = vmatpush3.bf16.msra.mxu1 %v4916_v52  ;;  %3334 = vmatprep.mubr.msk.bf16.mxu0 %vm722_vm1, %v1845_v38 }
 0x72d   :  { %3276 = vmatprep.subr.bf16.mxu1 %v1618_v53  ;;  %3278 = vmatprep.mubr.msk.bf16.mxu1 %vm128_vm0, %v4917_v39 }
 0x730   :  { %3277 = vmatpush3.bf16.msra.mxu1 %v1618_v53 }
 0x733   :  { %3279 = vmatmul.mubr.msk.bf16.vlgmr.msra.gmra.mxu1 %vm128_vm0, %v4918_v14  ;;  %3335 = vmatmul.mubr.msk.bf16.gmra.mxu0 %vm722_vm1, %v1846_v3 }
 0x734   :  { %3338 = vmatprep.mubr.msk.bf16.mxu0 %vm722_vm1, %v1847_v44  ;;  %3282 = vmatprep.mubr.msk.bf16.mxu1 %vm128_vm0, %v4919_v19 }
 0x73b   :  { %3283 = vmatmul.mubr.msk.bf16.gmra.mxu1 %vm128_vm0, %v4920_v60  ;;  %3339 = vmatmul.mubr.msk.bf16.gmra.mxu0 %vm722_vm1, %v1848_v34 }
 0x73c   :  { %3286 = vmatprep.mubr.msk.bf16.mxu1 %vm128_vm0, %v4921_v62 }
 0x743   :  { %3287 = vmatmul.mubr.msk.bf16.gmra.mxu1 %vm128_vm0, %v4922_v36 }
 0x744   :  { %3290 = vmatprep.mubr.msk.bf16.mxu1 %vm128_vm0, %v4923_v56 }
 0x74b   :  { %3291 = vmatmul.mubr.msk.bf16.gmra.mxu1 %vm128_vm0, %v4924_v15 }
 0x7e3   :  { %v3328_v47 = vpop.f32.mrf.mxu0 }
 0x7e4   :  { %v2040_v52 = vmul.f32 0.35355338, %v3328_v47 }
 0x7e5   :  { %v1975_v32 = vpop.f32.mrf.mxu0 }
 0x7e6   :  { %v2038_v49 = vmul.f32 0.35355338, %v1975_v32  ;;  %v4538_v45 = vadd.f32 %v4527_v24, %v2040_v52 }
 0x7e7   :  { %v3329_v11 = vpop.f32.mrf.mxu0 }
 0x7e8   :  { %v2041_v38 = vmul.f32 0.35355338, %v3329_v11  ;;  %v4530_v53 = vadd.f32 %v4527_v24, %v2038_v49 }
 0x7e9   :  { %v1978_v2 = vpop.f32.mrf.mxu0 }
 0x7ea   :  { %v4534_v58 = vadd.f32 %v4527_v24, %v2041_v38  ;;  %v2039_v51 = vmul.f32 0.35355338, %v1978_v2 }
 0x7eb   :  { %v3252_v12 = vpop.f32.mrf.mxu1  ;;  %v3332_v13 = vpop.f32.mrf.mxu0 }
 0x7ec   :  { %v4493_v57 = vadd.f32 %v3252_v12, %v4368_v7  ;;  %v2044_v44 = vmul.f32 0.35355338, %v3332_v13  ;;  %v4546_v14 = vadd.f32 %v4527_v24, %v2039_v51 }
 0x7ed   :  { %v1500_v35 = vpop.f32.mrf.mxu1  ;;  %v1991_v31 = vpop.f32.mrf.mxu0 }
 0x7ee   :  { %v4496_v20 = vadd.f32 %v1500_v35, %v4370_v46  ;;  %v2042_v61 = vmul.f32 0.35355338, %v1991_v31  ;;  %v4554_v41 = vadd.f32 %v4527_v24, %v2044_v44 }
 0x7ef   :  { %v3253_v59 = vpop.f32.mrf.mxu1  ;;  %v3333_v9 = vpop.f32.mrf.mxu0 }
 0x7f0   :  { %v4499_v0 = vadd.f32 %v3253_v59, %v4372_v5  ;;  %v2045_v30 = vmul.f32 0.35355338, %v3333_v9  ;;  %v4558_v34 = vadd.f32 %v4527_v24, %v2042_v61 }
 0x7f1   :  { %v1503_v6 = vpop.f32.mrf.mxu1  ;;  %v1994_v39 = vpop.f32.mrf.mxu0 }
 0x7f2   :  { %v4502_v1 = vadd.f32 %v1503_v6, %v4374_v43  ;;  %v2043_v3 = vmul.f32 0.35355338, %v1994_v39  ;;  %v4541_v55 = vadd.f32 %v4527_v24, %v2045_v30 }
 0x7f3   :  { %v4504_v10 = vpop.f32.mrf.mxu1  ;;  %v3336_v60 = vpop.f32.mrf.mxu0 }
 0x7f4   :  { %v4549_v19 = vadd.f32 %v4527_v24, %v2043_v3 }
 0x7f5   :  { %v4506_v50 = vpop.f32.mrf.mxu1  ;;  %v2007_v62 = vpop.f32.mrf.mxu0 }
 0x7f6   :  { %v2046_v47 = vmul.f32 0.35355338, %v2007_v62 }
 0x7f7   :  { %v4508_v4 = vpop.f32.mrf.mxu1  ;;  %v3337_v36 = vpop.f32.mrf.mxu0 }
 0x7f8   :  { %v2049_v12 = vmul.f32 0.35355338, %v3337_v36  ;;  %v4585_v32 = vadd.f32 %v4527_v24, %v2046_v47 }
 0x7f9   :  { %v4510_v7 = vpop.f32.mrf.mxu1  ;;  %v2010_v56 = vpop.f32.mrf.mxu0 }
 0x7fa   :  { %v2047_v59 = vmul.f32 0.35355338, %v2010_v56  ;;  %v4565_v6 = vadd.f32 %v4527_v24, %v2049_v12 }
 0x7fb   :  { %v4512_v22 = vpop.f32.mrf.mxu1  ;;  %v3340_v15 = vpop.f32.mrf.mxu0 }
 0x7fc   :  { %v2052_v11 = vmul.f32 0.35355338, %v3340_v15 }
 0x7fd   :  { %v4514_v46 = vpop.f32.mrf.mxu1  ;;  %v2023_v35 = vpop.f32.mrf.mxu0 }
 0x7fe   :  { %v4589_v49 = vadd.f32 %v4527_v24, %v2052_v11  ;;  %v2050_v31 = vmul.f32 0.35355338, %v2023_v35 }
 0x7ff   :  { %v3285_v54 = vpop.f32.mrf.mxu1 }
 0x800   :  { %v4593_v9 = vadd.f32 %v4527_v24, %v2050_v31 }
 0x801   :  { %v4516_v29 = vpop.f32.mrf.mxu1 }
 0x803   :  { %v3288_v5 = vpop.f32.mrf.mxu1 }
 0x805   :  { %v1686_v37 = vpop.f32.mrf.mxu1 }
 0x807   :  { %v3289_v17 = vpop.f32.mrf.mxu1 }
 0x809   :  { %v1689_v43 = vpop.f32.mrf.mxu1 }
 0x80b   :  { %v3292_v25 = vpop.f32.mrf.mxu1 }
 0x80c   :  { %1793 = vrot.lane.b32.xlu1 %v3292_v25, %s3653_s12 }
 0x80d   :  { %v1702_v23 = vpop.f32.mrf.mxu1 }
 0x80f   :  { %v3293_v42 = vpop.f32.mrf.mxu1 }
 0x810   :  { %1795 = vrot.lane.b32.xlu0 %v3293_v42, %s3653_s12  ;;  %1789 = vrot.lane.b32.xlu1 %v1702_v23, %s3653_s12 }
 0x811   :  { %v1705_v27 = vpop.f32.mrf.mxu1 }
 0x814   :  { %1779 = vrot.lane.b32.xlu0 %v3289_v17, %s3654_s20  ;;  %v4569_v17 = vadd.f32 %v4527_v24, %v2047_v59 }
 0x818   :  { %1777 = vrot.lane.b32.xlu0 %v3288_v5, %s3654_s20  ;;  %v3341_v5 = vpop.f32.mrf.mxu0 }
 0x81c   :  { %1791 = vrot.lane.b32.xlu0 %v1705_v27, %s3653_s12 }
 0x834   :  { %2075 = vmax.xlane.f32.xlu1 %v4530_v53 }
 0x838   :  { %2081 = vmax.xlane.f32.xlu1 %v4534_v58 }
 0x83b   :  { %2079 = vmax.xlane.f32.xlu0 %v4538_v45 }
 0x83c   :  { %2089 = vmax.xlane.f32.xlu1 %v4541_v55 }
 0x83f   :  { %2077 = vmax.xlane.f32.xlu0 %v4546_v14 }
 0x840   :  { %2085 = vmax.xlane.f32.xlu1 %v4549_v19 }
 0x843   :  { %2087 = vmax.xlane.f32.xlu0 %v4554_v41 }
 0x847   :  { %2083 = vmax.xlane.f32.xlu0 %v4558_v34 }
 0x851   :  { %1775 = vrot.lane.b32.xlu1 %v1689_v43, %s3654_s20  ;;  %v2053_v43 = vmul.f32 0.35355338, %v3341_v5 }
 0x853   :  { %v4573_v25 = vadd.f32 %v4527_v24, %v2053_v43 }
 0x85d   :  { %1773 = vrot.lane.b32.xlu0 %v1686_v37, %s3654_s20  ;;  %v2026_v37 = vpop.f32.mrf.mxu0 }
 0x85e   :  { %v2051_v23 = vmul.f32 0.35355338, %v2026_v37 }
 0x860   :  { %v4580_v27 = vadd.f32 %v4527_v24, %v2051_v23 }
 0x861   :  { %1763 = vrot.lane.b32.xlu0 %v3285_v54, %s3655_s21  ;;  %v2048_v54 = vmul.f32 0.35355338, %v3336_v60 }
 0x863   :  { %v4577_v42 = vadd.f32 %v4527_v24, %v2048_v54 }
 0x875   :  { %2097 = vmax.xlane.f32.xlu1 %v4565_v6 }
 0x879   :  { %2093 = vmax.xlane.f32.xlu1 %v4569_v17 }
 0x87d   :  { %2105 = vmax.xlane.f32.xlu1 %v4573_v25 }
 0x87e   :  { %v1794_v13 = vpop.permute.xlu1 %1793 }
 0x880   :  { %2095 = vmax.xlane.f32.xlu0 %v4577_v42 }
 0x881   :  { %2101 = vmax.xlane.f32.xlu1 %v4580_v27 }
 0x882   :  { %v1796_v2 = vpop.permute.xlu0 %1795  ;;  %v1790_v39 = vpop.permute.xlu1 %1789 }
 0x883   :  { %3342 = vmatprep.subr.mxu1 %v1796_v2 }
 0x884   :  { %2091 = vmax.xlane.f32.xlu0 %v4585_v32  ;;  %3343 = vmatpush3.msra.mxu1 %v1796_v2 }
 0x885   :  { %3344 = vmatprep.subr.mxu1 %v1794_v13 }
 0x886   :  { %v1780_v38 = vpop.permute.xlu0 %1779  ;;  %3345 = vmatpush3.msra.mxu1 %v1794_v13 }
 0x888   :  { %2103 = vmax.xlane.f32.xlu0 %v4589_v49 }
 0x88a   :  { %v1778_v52 = vpop.permute.xlu0 %1777 }
 0x88c   :  { %2099 = vmax.xlane.f32.xlu0 %v4593_v9 }
 0x88e   :  { %v1792_v30 = vpop.permute.xlu0 %1791 }
 0x88f   :  { %3346 = vmatprep.subr.mxu1 %v1792_v30 }
 0x890   :  { %3347 = vmatpush3.msra.mxu1 %v1792_v30 }
 0x891   :  { %3348 = vmatprep.subr.mxu1 %v1790_v39 }
 0x892   :  { %3349 = vmatpush3.msra.mxu1 %v1790_v39 }
 0x893   :  { %3350 = vmatprep.subr.mxu1 %v1780_v38 }
 0x894   :  { %3351 = vmatpush3.msra.mxu1 %v1780_v38 }
 0x895   :  { %3352 = vmatprep.subr.mxu1 %v1778_v52 }
 0x896   :  { %3353 = vmatpush3.msra.mxu1 %v1778_v52 }
 0x8a2   :  { %1761 = vrot.lane.b32.xlu0 %v4512_v22, %s3655_s21 }
 0x8bd   :  { %v2076_v51 = vpop.xlane.xlu1 %2075 }
 0x8be   :  { %v2107_v24 = vsub.f32 %v4530_v53, %v2076_v51 }
 0x8c0   :  { %v2123_v3 = vmul.f32 1.442695, %v2107_v24 }
 0x8c1   :  { %v2082_v44 = vpop.xlane.xlu1 %2081 }
 0x8c2   :  { %3564 = vpow2.f32 %v2123_v3  ;;  %v2110_v61 = vsub.f32 %v4534_v58, %v2082_v44 }
 0x8c4   :  { %v2129_v60 = vmul.f32 1.442695, %v2110_v61  ;;  %v2080_v62 = vpop.xlane.xlu0 %2079 }
 0x8c5   :  { %v2109_v36 = vsub.f32 %v4538_v45, %v2080_v62  ;;  %v2090_v56 = vpop.xlane.xlu1 %2089 }
 0x8c6   :  { %3566 = vpow2.f32 %v2129_v60  ;;  %v2114_v53 = vsub.f32 %v4541_v55, %v2090_v56 }
 0x8c7   :  { %v2127_v15 = vmul.f32 1.442695, %v2109_v36 }
 0x8c8   :  { %v2078_v12 = vpop.xlane.xlu0 %2077  ;;  %v2137_v54 = vmul.f32 1.442695, %v2114_v53 }
 0x8c9   :  { %3568 = vpow2.f32 %v2127_v15  ;;  %v2108_v35 = vsub.f32 %v4546_v14, %v2078_v12  ;;  %v2086_v22 = vpop.xlane.xlu1 %2085 }
 0x8ca   :  { %v2112_v14 = vsub.f32 %v4549_v19, %v2086_v22 }
 0x8cb   :  { %v2125_v59 = vmul.f32 1.442695, %v2108_v35 }
 0x8cc   :  { %v2088_v5 = vpop.xlane.xlu0 %2087  ;;  %v2133_v2 = vmul.f32 1.442695, %v2112_v14 }
 0x8cd   :  { %3570 = vpow2.f32 %v2125_v59  ;;  %v2113_v43 = vsub.f32 %v4554_v41, %v2088_v5  ;;  %v1776_v58 = vpop.permute.xlu1 %1775 }
 0x8ce   :  { %3354 = vmatprep.subr.mxu1 %v1776_v58 }
 0x8cf   :  { %v4604_v37 = vpop.eup %3564  ;;  %v2135_v45 = vmul.f32 1.442695, %v2113_v43  ;;  %3355 = vmatpush3.msra.mxu1 %v1776_v58 }
 0x8d0   :  { %v2084_v23 = vpop.xlane.xlu0 %2083  ;;  %2155 = vadd.xlane.f32.xlu1 %v4604_v37 }
 0x8d1   :  { %3572 = vpow2.f32 %v2135_v45  ;;  %v2111_v47 = vsub.f32 %v4558_v34, %v2084_v23  ;;  %v4658_v23 = vld [vmem:[%s4884_s7] sm:$0xff] }
 0x8d2   :  { %3574 = vpow2.f32 %v2137_v54 }
 0x8d3   :  { %v4609_v55 = vpop.eup %3566  ;;  %v2131_v11 = vmul.f32 1.442695, %v2111_v47 }
 0x8d4   :  { %v1774_v41 = vpop.permute.xlu0 %1773  ;;  %2161 = vadd.xlane.f32.xlu1 %v4609_v55 }
 0x8d5   :  { %3576 = vpow2.f32 %v2131_v11  ;;  %3356 = vmatprep.subr.mxu1 %v1774_v41 }
 0x8d6   :  { %v4612_v13 = vpop.eup %3568  ;;  %3357 = vmatpush3.msra.mxu1 %v1774_v41  ;;  %3578 = vpow2.f32 %v2133_v2 }
 0x8d7   :  { %2159 = vadd.xlane.f32.xlu0 %v4612_v13 }
 0x8d8   :  { %v1764_v31 = vpop.permute.xlu0 %1763 }
 0x8d9   :  { %3358 = vmatprep.subr.mxu1 %v1764_v31 }
 0x8da   :  { %v4615_v19 = vpop.eup %3570  ;;  %3359 = vmatpush3.msra.mxu1 %v1764_v31 }
 0x8db   :  { %2157 = vadd.xlane.f32.xlu1 %v4615_v19 }
 0x8de   :  { %v4618_v34 = vpop.eup %3572 }
 0x8df   :  { %2167 = vadd.xlane.f32.xlu1 %v4618_v34  ;;  %v4621_v38 = vpop.eup %3574 }
 0x8e2   :  { %v4623_v52 = vpop.eup %3576 }
 0x8e3   :  { %2163 = vadd.xlane.f32.xlu0 %v4623_v52  ;;  %2169 = vadd.xlane.f32.xlu1 %v4621_v38  ;;  %v4627_v30 = vpop.eup %3578 }
 0x8e7   :  { %2165 = vadd.xlane.f32.xlu1 %v4627_v30 }
 0x8f8   :  { %1759 = vrot.lane.b32.xlu1 %v4516_v29, %s3655_s21 }
 0x8f9   :  { %1757 = vrot.lane.b32.xlu0 %v4514_v46, %s3655_s21 }
 0x8fe   :  { %v2098_v39 = vpop.xlane.xlu1 %2097 }
 0x8ff   :  { %v2118_v56 = vsub.f32 %v4565_v6, %v2098_v39 }
 0x901   :  { %v2145_v22 = vmul.f32 1.442695, %v2118_v56 }
 0x902   :  { %v2094_v51 = vpop.xlane.xlu1 %2093 }
 0x903   :  { %v2116_v24 = vsub.f32 %v4569_v17, %v2094_v51 }
 0x905   :  { %v2141_v3 = vmul.f32 1.442695, %v2116_v24 }
 0x906   :  { %v2106_v44 = vpop.xlane.xlu1 %2105 }
 0x907   :  { %3580 = vpow2.f32 %v2141_v3  ;;  %v2122_v17 = vsub.f32 %v4573_v25, %v2106_v44 }
 0x909   :  { %v2096_v61 = vpop.xlane.xlu0 %2095 }
 0x90a   :  { %v2117_v60 = vsub.f32 %v4577_v42, %v2096_v61  ;;  %v2102_v15 = vpop.xlane.xlu1 %2101  ;;  %v3647_v61 = vld [vmem:[%s4880_s0 + $0x18] sm:$0xff] }
 0x90b   :  { %v2120_v46 = vsub.f32 %v4580_v27, %v2102_v15 }
 0x90c   :  { %v2143_v62 = vmul.f32 1.442695, %v2117_v60 }
 0x90d   :  { %v2092_v36 = vpop.xlane.xlu0 %2091  ;;  %v2149_v59 = vmul.f32 1.442695, %v2120_v46 }
 0x90e   :  { %3582 = vpow2.f32 %v2143_v62  ;;  %v2115_v29 = vsub.f32 %v4585_v32, %v2092_v36  ;;  %v2153_v32 = vmul.f32 1.442695, %v2122_v17  ;;  %v3648_v62 = vld [vmem:[%s4880_s0 + $0x10] sm:$0xff] }
 0x910   :  { %v2139_v12 = vmul.f32 1.442695, %v2115_v29 }
 0x911   :  { %v2104_v35 = vpop.xlane.xlu0 %2103 }
 0x912   :  { %3584 = vpow2.f32 %v2139_v12  ;;  %v2121_v42 = vsub.f32 %v4589_v49, %v2104_v35  ;;  %v4925_v49 = vld [vmem:[#allocation2_spill] sm:$0xff] }
 0x913   :  { %3586 = vpow2.f32 %v2145_v22 }
 0x914   :  { %v4642_v6 = vpop.eup %3580  ;;  %3588 = vpow2.f32 %v2149_v59  ;;  %v2151_v58 = vmul.f32 1.442695, %v2121_v42 }
 0x915   :  { %v2100_v53 = vpop.xlane.xlu0 %2099 }
 0x916   :  { %v2119_v5 = vsub.f32 %v4593_v9, %v2100_v53  ;;  %v2610_v9 = vsub.s32 3, %v4925_v49 }
 0x918   :  { %v2147_v43 = vmul.f32 1.442695, %v2119_v5  ;;  %2173 = vadd.xlane.f32.xlu0 %v4642_v6  ;;  %v4661_v14 = vrot.slane %v4658_v23, %v2610_v9 }
 0x919   :  { %v1762_v27 = vpop.permute.xlu0 %1761 }
 0x91a   :  { %3590 = vpow2.f32 %v2147_v43  ;;  %3360 = vmatprep.subr.mxu1 %v1762_v27  ;;  %v2612_v41 = vadd.f32 %v4661_v14, %v4496_v20  ;;  %v2613_v2 = vadd.f32 %v4661_v14, %v4502_v1  ;;  %v2614_v51 = vadd.f32 %v4661_v14, %v4493_v57  ;;  %v3645_v20 = vld [vmem:[%s4880_s0 + $0x8] sm:$0xff]  ;;  %v3646_v1 = vld [vmem:[%s4880_s0] sm:$0xff] }
 0x91b   :  { %v4645_v45 = vpop.eup %3582  ;;  %3361 = vmatpush3.msra.mxu1 %v1762_v27  ;;  %3592 = vpow2.f32 %v2153_v32  ;;  %v2615_v24 = vadd.f32 %v4661_v14, %v4499_v0 }
 0x91c   :  { %2175 = vadd.xlane.f32.xlu0 %v4645_v45  ;;  %3594 = vpow2.f32 %v2151_v58  ;;  %v4684_v3 = vadd.f32 %v3645_v20, %v2613_v2  ;;  %v4689_v44 = vadd.f32 %v3646_v1, %v2612_v41  ;;  %v4705_v36 = vadd.f32 %v3648_v62, %v2614_v51 }
 0x91d   :  { %v4700_v60 = vadd.f32 %v3647_v61, %v2615_v24 }
 0x91e   :  { %v2631_v57 = vsel %vm128_vm0, %v4684_v3, 0.0  ;;  %v2628_v0 = vsel %vm128_vm0, %v4689_v44, 0.0  ;;  %v2634_v15 = vsel %vm128_vm0, %v4705_v36, 0.0 }
 0x91f   :  { %v4648_v25 = vpop.eup %3584  ;;  %v2637_v56 = vsel %vm128_vm0, %v4700_v60, 0.0 }
 0x920   :  { %2171 = vadd.xlane.f32.xlu1 %v4648_v25  ;;  %v4652_v54 = vpop.eup %3586 }
 0x921   :  { %v4663_v47 = vpop.eup %3588 }
 0x924   :  { %2177 = vadd.xlane.f32.xlu1 %v4652_v54 }
 0x927   :  { %v4665_v11 = vpop.eup %3590 }
 0x928   :  { %2179 = vadd.xlane.f32.xlu0 %v4665_v11  ;;  %2181 = vadd.xlane.f32.xlu1 %v4663_v47  ;;  %v4673_v31 = vpop.eup %3592 }
 0x929   :  { %v4675_v39 = vpop.eup %3594 }
 0x92c   :  { %2183 = vadd.xlane.f32.xlu0 %v4675_v39  ;;  %2185 = vadd.xlane.f32.xlu1 %v4673_v31 }
 0x930   :  { %2632 = vadd.xlane.f32.xlu1 %v2631_v57  ;;  %2629 = vadd.xlane.f32.xlu0 %v2628_v0 }
 0x934   :  { %2638 = vadd.xlane.f32.xlu1 %v2637_v56  ;;  %2635 = vadd.xlane.f32.xlu0 %v2634_v15 }
 0x959   :  { %v2156_v29 = vpop.xlane.xlu1 %2155 }
 0x95a   :  { %3596 = vrcp.f32 %v2156_v29 }
 0x95d   :  { %v2162_v12 = vpop.xlane.xlu1 %2161 }
 0x960   :  { %v2160_v35 = vpop.xlane.xlu0 %2159 }
 0x964   :  { %v2158_v46 = vpop.xlane.xlu1 %2157 }
 0x965   :  { %3598 = vrcp.f32 %v2158_v46 }
 0x966   :  { %3600 = vrcp.f32 %v2160_v35 }
 0x967   :  { %3602 = vrcp.f32 %v2162_v12  ;;  %v3597_v53 = vpop.eup %3596 }
 0x968   :  { %v2168_v22 = vpop.xlane.xlu1 %2167  ;;  %v2203_v43 = vmul.f32 %v3597_v53, %v4604_v37 }
 0x96c   :  { %v2164_v17 = vpop.xlane.xlu0 %2163  ;;  %v2170_v59 = vpop.xlane.xlu1 %2169 }
 0x96d   :  { %3604 = vrcp.f32 %v2164_v17 }
 0x970   :  { %v2166_v42 = vpop.xlane.xlu1 %2165  ;;  %v1758_v9 = vpop.permute.xlu0 %1757 }
 0x971   :  { %3606 = vrcp.f32 %v2166_v42 }
 0x972   :  { %v3599_v5 = vpop.eup %3598  ;;  %3608 = vrcp.f32 %v2170_v59 }
 0x973   :  { %v2204_v32 = vmul.f32 %v3599_v5, %v4615_v19  ;;  %3610 = vrcp.f32 %v2168_v22  ;;  %v3601_v41 = vpop.eup %3600 }
 0x974   :  { %v1760_v27 = vpop.permute.xlu1 %1759  ;;  %v3603_v2 = vpop.eup %3602  ;;  %v2205_v37 = vmul.f32 %v3601_v41, %v4612_v13 }
 0x975   :  { %3362 = vmatprep.subr.mxu1 %v1760_v27  ;;  %v2219_v58 = vpack.c.bf16 %v2204_v32, %v2203_v43  ;;  %v2206_v51 = vmul.f32 %v3603_v2, %v4609_v55 }
 0x976   :  { %3363 = vmatpush3.msra.mxu1 %v1760_v27 }
 0x977   :  { %3364 = vmatprep.subr.mxu1 %v1758_v9  ;;  %3374 = vmatprep.mubr.bf16.mxu1 %v2219_v58  ;;  %v2220_v20 = vpack.c.bf16 %v2206_v51, %v2205_v37 }
 0x978   :  { %3365 = vmatpush3.msra.mxu1 %v1758_v9 }
 0x979   :  { %3366 = vmatprep.subr.mxu1 %v4508_v4 }
 0x97a   :  { %3367 = vmatpush3.msra.mxu1 %v4508_v4  ;;  %v3605_v19 = vpop.eup %3604 }
 0x97b   :  { %3368 = vmatprep.subr.mxu1 %v4504_v10  ;;  %v2207_v1 = vmul.f32 %v3605_v19, %v4623_v52 }
 0x97c   :  { %3369 = vmatpush3.msra.mxu1 %v4504_v10 }
 0x97d   :  { %3370 = vmatprep.subr.mxu1 %v4510_v7 }
 0x97e   :  { %v3607_v24 = vpop.eup %3606  ;;  %3371 = vmatpush3.msra.mxu1 %v4510_v7 }
 0x97f   :  { %3372 = vmatprep.subr.mxu1 %v4506_v50  ;;  %v2208_v4 = vmul.f32 %v3607_v24, %v4627_v30  ;;  %v3609_v57 = vpop.eup %3608 }
 0x980   :  { %3373 = vmatpush3.msra.mxu1 %v4506_v50  ;;  %v3611_v10 = vpop.eup %3610  ;;  %v2210_v7 = vmul.f32 %v3609_v57, %v4621_v38 }
 0x981   :  { %3375 = vmatmul.mubr.bf16.vlgmr.msra.gmra.mxu1 %v2220_v20  ;;  %v2221_v13 = vpack.c.bf16 %v2208_v4, %v2207_v1  ;;  %3418 = vmatprep.subr.msk.bf16.mxu1 %vm1260_vm2, %v4287_v33  ;;  %v2209_v55 = vmul.f32 %v3611_v10, %v4618_v34 }
 0x982   :  { %3391 = vmatpush3.bf16.msra.mxu1 %v4293_v18 }
 0x983   :  { %3378 = vmatprep.mubr.bf16.mxu1 %v2221_v13  ;;  %3419 = vmatprep.subr.msk.bf16.mxu1 %vm1260_vm2, %v4284_v26  ;;  %v2222_v52 = vpack.c.bf16 %v2210_v7, %v2209_v55  ;;  %v4926_v7 = vld [vmem:[#allocation11_spill] sm:$0xff] }
 0x989   :  { %3379 = vmatmul.mubr.bf16.gmra.mxu1 %v2222_v52 }
 0x9a1   :  { %v2174_v30 = vpop.xlane.xlu0 %2173 }
 0x9a2   :  { %3612 = vrcp.f32 %v2174_v30 }
 0x9a5   :  { %v2176_v50 = vpop.xlane.xlu0 %2175 }
 0x9a9   :  { %v2172_v0 = vpop.xlane.xlu1 %2171 }
 0x9aa   :  { %3614 = vrcp.f32 %v2172_v0 }
 0x9ab   :  { %3616 = vrcp.f32 %v2176_v50 }
 0x9ad   :  { %v2178_v33 = vpop.xlane.xlu1 %2177 }
 0x9ae   :  { %3618 = vrcp.f32 %v2178_v33 }
 0x9af   :  { %v3613_v38 = vpop.eup %3612 }
 0x9b0   :  { %v2212_v15 = vmul.f32 %v3613_v38, %v4642_v6 }
 0x9b1   :  { %v2180_v61 = vpop.xlane.xlu0 %2179  ;;  %v2182_v18 = vpop.xlane.xlu1 %2181 }
 0x9b2   :  { %3620 = vrcp.f32 %v2180_v61 }
 0x9b3   :  { %3622 = vrcp.f32 %v2182_v18 }
 0x9b5   :  { %v2184_v62 = vpop.xlane.xlu0 %2183  ;;  %v2186_v56 = vpop.xlane.xlu1 %2185 }
 0x9b6   :  { %3624 = vrcp.f32 %v2184_v62  ;;  %v4927_v62 = vld [vmem:[#allocation13_spill] sm:$0xff] }
 0x9b7   :  { %v3615_v26 = vpop.eup %3614  ;;  %3626 = vrcp.f32 %v2186_v56 }
 0x9b8   :  { %v2211_v34 = vmul.f32 %v3615_v26, %v4648_v25  ;;  %v3617_v29 = vpop.eup %3616 }
 0x9b9   :  { %v2213_v35 = vmul.f32 %v3617_v29, %v4645_v45 }
 0x9ba   :  { %v2223_v12 = vpack.c.bf16 %v2212_v15, %v2211_v34 }
 0x9bb   :  { %v3619_v46 = vpop.eup %3618 }
 0x9bc   :  { %3382 = vmatprep.mubr.bf16.mxu1 %v2223_v12  ;;  %v2214_v22 = vmul.f32 %v3619_v46, %v4652_v54 }
 0x9be   :  { %v2224_v17 = vpack.c.bf16 %v2214_v22, %v2213_v35 }
 0x9bf   :  { %v3621_v59 = vpop.eup %3620 }
 0x9c0   :  { %v3623_v53 = vpop.eup %3622  ;;  %3383 = vmatmul.mubr.bf16.gmra.mxu1 %v2224_v17  ;;  %v2215_v42 = vmul.f32 %v3621_v59, %v4665_v11 }
 0x9c1   :  { %v2216_v5 = vmul.f32 %v3623_v53, %v4663_v47 }
 0x9c3   :  { %v3625_v43 = vpop.eup %3624  ;;  %v2225_v25 = vpack.c.bf16 %v2216_v5, %v2215_v42 }
 0x9c4   :  { %v3627_v32 = vpop.eup %3626  ;;  %v2217_v6 = vmul.f32 %v3625_v43, %v4675_v39 }
 0x9c5   :  { %3386 = vmatprep.mubr.bf16.mxu1 %v2225_v25  ;;  %v2218_v27 = vmul.f32 %v3627_v32, %v4673_v31 }
 0x9c7   :  { %v2226_v58 = vpack.c.bf16 %v2218_v27, %v2217_v6 }
 0x9c9   :  { %3387 = vmatmul.mubr.bf16.gmra.mxu1 %v2226_v58 }
 0xa41   :  { %v3376_v45 = vpop.f32.mrf.mxu1 }
 0xa43   :  { %v2293_v54 = vpop.f32.mrf.mxu1 }
 0xa44   :  { %v2356_v20 = vmul.f32 %v2293_v54, %v4303_v28 }
 0xa45   :  { %v3377_v9 = vpop.f32.mrf.mxu1 }
 0xa46   :  { %v2359_v13 = vmul.f32 %v3377_v9, %v4303_v28 }
 0xa47   :  { %v2296_v41 = vpop.f32.mrf.mxu1 }
 0xa48   :  { %v2357_v51 = vmul.f32 %v2296_v41, %v4303_v28 }
 0xa49   :  { %v3380_v2 = vpop.f32.mrf.mxu1 }
 0xa4a   :  { %v2364_v31 = vmul.f32 %v3380_v2, %v4298_v8  ;;  %v2360_v57 = vpack.c.bf16 %v2357_v51, %v2356_v20 }
 0xa4b   :  { %v2309_v37 = vpop.f32.mrf.mxu1 }
 0xa4c   :  { %v2362_v24 = vmul.f32 %v2309_v37, %v4298_v8 }
 0xa4d   :  { %v3381_v19 = vpop.f32.mrf.mxu1 }
 0xa4e   :  { %v2365_v11 = vmul.f32 %v3381_v19, %v4298_v8  ;;  %v2633_v19 = vpop.xlane.xlu1 %2632 }
 0xa4f   :  { %v2312_v47 = vpop.f32.mrf.mxu1 }
 0xa50   :  { %v2363_v39 = vmul.f32 %v2312_v47, %v4298_v8  ;;  %v2367_v4 = vpack.c.bf16 %v2365_v11, %v2364_v31  ;;  %v2358_v8 = vmul.f32 %v3376_v45, %v4303_v28 }
 0xa52   :  { %v2366_v1 = vpack.c.bf16 %v2363_v39, %v2362_v24  ;;  %v2361_v10 = vpack.c.bf16 %v2359_v13, %v2358_v8 }
 0xa54   :  { %3392 = vmatprep.mubr.msk.bf16.mxu1 %vm722_vm1, %v2366_v1 }
 0xa55   :  { %3393 = vmatmul.mubr.msk.bf16.vlgmr.msra.gmra.mxu1 %vm722_vm1, %v2367_v4 }
 0xa56   :  { %3398 = vmatprep.mubr.msk.bf16.mxu1 %vm722_vm1, %v2360_v57  ;;  %3397 = vmatpush3.bf16.msra.mxu1 %v4311_v48 }
 0xa57   :  { %3420 = vmatprep.subr.msk.bf16.mxu1 %vm1260_vm2, %v4081_v40 }
 0xa5d   :  { %3399 = vmatmul.mubr.msk.bf16.vlgmr.msra.gmra.mxu1 %vm722_vm1, %v2361_v10  ;;  %v3649_v10 = vld [vmem:[%s4880_s0 + $0x20] sm:$0xff] }
 0xa5e   :  { %3403 = vmatpush3.bf16.msra.mxu1 %v4322_v63 }
 0xa5f   :  { %3421 = vmatprep.subr.msk.bf16.mxu1 %vm1260_vm2, %v4926_v7 }
 0xa80   :  { %v3384_v55 = vpop.f32.mrf.mxu1 }
 0xa81   :  { %v2480_v28 = vmul.f32 %v3384_v55, %v4327_v16  ;;  %v2654_v55 = vmul.f32 0.03125, %v2633_v19 }
 0xa82   :  { %v2325_v52 = vpop.f32.mrf.mxu1 }
 0xa83   :  { %v2478_v0 = vmul.f32 %v2325_v52, %v4327_v16 }
 0xa84   :  { %v3385_v30 = vpop.f32.mrf.mxu1 }
 0xa85   :  { %v2481_v48 = vmul.f32 %v3385_v30, %v4327_v16 }
 0xa86   :  { %v2328_v50 = vpop.f32.mrf.mxu1 }
 0xa87   :  { %v2479_v40 = vmul.f32 %v2328_v50, %v4327_v16  ;;  %v2483_v18 = vpack.c.bf16 %v2481_v48, %v2480_v28  ;;  %v2639_v48 = vpop.xlane.xlu1 %2638  ;;  %v3650_v28 = vld [vmem:[%s4880_s0 + $0x30] sm:$0xff] }
 0xa89   :  { %v2482_v33 = vpack.c.bf16 %v2479_v40, %v2478_v0  ;;  %v3388_v61 = vpop.f32.mrf.mxu1 }
 0xa8a   :  { %v2545_v16 = vmul.f32 %v3388_v61, %v4454_v21  ;;  %v3651_v61 = vld [vmem:[%s4880_s0 + $0x28] sm:$0xff] }
 0xa8b   :  { %v2341_v38 = vpop.f32.mrf.mxu1  ;;  %3404 = vmatprep.mubr.msk.bf16.mxu1 %vm722_vm1, %v2482_v33 }
 0xa8c   :  { %3405 = vmatmul.mubr.msk.bf16.vlgmr.msra.gmra.mxu1 %vm722_vm1, %v2483_v18  ;;  %v2543_v34 = vmul.f32 %v2341_v38, %v4454_v21  ;;  %v4789_v18 = vsub.f32 %v4684_v3, %v2654_v55  ;;  %v2656_v38 = vmul.f32 0.03125, %v2639_v48 }
 0xa8d   :  { %v3389_v63 = vpop.f32.mrf.mxu1  ;;  %3409 = vmatpush3.bf16.msra.mxu1 %v4927_v62 }
 0xa8e   :  { %v2546_v56 = vmul.f32 %v3389_v63, %v4454_v21  ;;  %v2670_v3 = vmul.f32 %v4789_v18, %v4789_v18 }
 0xa8f   :  { %v2344_v26 = vpop.f32.mrf.mxu1 }
 0xa90   :  { %v2544_v15 = vmul.f32 %v2344_v26, %v4454_v21  ;;  %v2548_v12 = vpack.c.bf16 %v2546_v56, %v2545_v16  ;;  %v2630_v21 = vpop.xlane.xlu0 %2629  ;;  %v3652_v26 = vld [vmem:[%s4880_s0 + $0x38] sm:$0xff] }
 0xa91   :  { %v2653_v24 = vmul.f32 0.03125, %v2630_v21 }
 0xa92   :  { %v2547_v29 = vpack.c.bf16 %v2544_v15, %v2543_v34  ;;  %v4804_v15 = vsub.f32 %v4700_v60, %v2656_v38 }
 0xa93   :  { %v4777_v52 = vsub.f32 %v4689_v44, %v2653_v24 }
 0xa94   :  { %3410 = vmatprep.mubr.msk.bf16.mxu1 %vm722_vm1, %v2547_v29  ;;  %v2636_v31 = vpop.xlane.xlu0 %2635 }
 0xa95   :  { %3411 = vmatmul.mubr.msk.bf16.vlgmr.msra.gmra.mxu1 %vm722_vm1, %v2548_v12  ;;  %v2655_v30 = vmul.f32 0.03125, %v2636_v31  ;;  %v2680_v12 = vsel %vm128_vm0, %v2670_v3, 0.0 }
 0xa97   :  { %v4794_v63 = vsub.f32 %v4705_v36, %v2655_v30 }
 0xa99   :  { %v2671_v29 = vmul.f32 %v4794_v63, %v4794_v63 }
 0xb15   :  { %v3394_v46 = vpop.f32.mrf.mxu1 }
 0xb17   :  { %v2408_v35 = vpop.f32.mrf.mxu1 }
 0xb19   :  { %v3395_v22 = vpop.f32.mrf.mxu1 }
 0xb1b   :  { %v2411_v17 = vpop.f32.mrf.mxu1 }
 0xb1d   :  { %v3400_v59 = vpop.f32.mrf.mxu1 }
 0xb1e   :  { %v2472_v6 = vadd.f32 %v3400_v59, %v3394_v46  ;;  %v2683_v46 = vsel %vm128_vm0, %v2671_v29, 0.0 }
 0xb1f   :  { %v2463_v53 = vpop.f32.mrf.mxu1 }
 0xb20   :  { %v2464_v58 = vadd.f32 %v2463_v53, %v2408_v35  ;;  %v2672_v35 = vmul.f32 %v4804_v15, %v4804_v15 }
 0xb21   :  { %v3401_v42 = vpop.f32.mrf.mxu1 }
 0xb22   :  { %v2475_v9 = vadd.f32 %v3401_v42, %v3395_v22  ;;  %v2686_v60 = vsel %vm128_vm0, %v2672_v35, 0.0 }
 0xb23   :  { %v2466_v5 = vpop.f32.mrf.mxu1 }
 0xb24   :  { %v2467_v11 = vadd.f32 %v2466_v5, %v2411_v17 }
 0xb4c   :  { %v3406_v43 = vpop.f32.mrf.mxu1 }
 0xb4d   :  { %v2541_v45 = vadd.f32 %v3406_v43, %v2472_v6 }
 0xb4e   :  { %v2524_v25 = vpop.f32.mrf.mxu1 }
 0xb4f   :  { %v2539_v41 = vadd.f32 %v2524_v25, %v2464_v58 }
 0xb50   :  { %v3407_v32 = vpop.f32.mrf.mxu1 }
 0xb51   :  { %v2542_v47 = vadd.f32 %v3407_v32, %v2475_v9 }
 0xb52   :  { %v2527_v27 = vpop.f32.mrf.mxu1 }
 0xb53   :  { %v2540_v20 = vadd.f32 %v2527_v27, %v2467_v11 }
 0xb55   :  { %v3412_v54 = vpop.f32.mrf.mxu1 }
 0xb56   :  { %v2606_v2 = vadd.f32 %v3412_v54, %v2541_v45 }
 0xb57   :  { %v2589_v37 = vpop.f32.mrf.mxu1 }
 0xb58   :  { %v2604_v51 = vadd.f32 %v2589_v37, %v2539_v41  ;;  %v2618_v1 = vadd.f32 %v4661_v14, %v2606_v2 }
 0xb59   :  { %v3413_v39 = vpop.f32.mrf.mxu1 }
 0xb5a   :  { %v2616_v4 = vadd.f32 %v4661_v14, %v2604_v51  ;;  %v2607_v57 = vadd.f32 %v3413_v39, %v2542_v47  ;;  %v2626_v33 = vadd.f32 %v3650_v28, %v2618_v1 }
 0xb5b   :  { %v2592_v13 = vpop.f32.mrf.mxu1 }
 0xb5c   :  { %v2605_v8 = vadd.f32 %v2592_v13, %v2540_v20  ;;  %v2624_v7 = vadd.f32 %v3649_v10, %v2616_v4  ;;  %v2619_v50 = vadd.f32 %v4661_v14, %v2607_v57  ;;  %v2646_v56 = vsel %vm128_vm0, %v2626_v33, 0.0 }
 0xb5d   :  { %v2735_v10 = vsub.s32 4, %v4925_v49 }
 0xb5e   :  { %v2617_v0 = vadd.f32 %v4661_v14, %v2605_v8  ;;  %v2640_v40 = vsel %vm128_vm0, %v2624_v7, 0.0  ;;  %v2669_v14 = vmul.f32 %v4777_v52, %v4777_v52  ;;  %v2627_v34 = vadd.f32 %v3652_v26, %v2619_v50 }
 0xb5f   :  { %2641 = vadd.xlane.f32.xlu0 %v2640_v40  ;;  %v2736_v55 = vrot.slane %v4658_v23, %v2735_v10 }
 0xb60   :  { %v2625_v44 = vadd.f32 %v3651_v61, %v2617_v0  ;;  %v2649_v36 = vsel %vm128_vm0, %v2627_v34, 0.0  ;;  %v2677_v16 = vsel %vm128_vm0, %v2669_v14, 0.0 }
 0xb62   :  { %v2643_v62 = vsel %vm128_vm0, %v2625_v44, 0.0 }
 0xb63   :  { %2644 = vadd.xlane.f32.xlu1 %v2643_v62  ;;  %2647 = vadd.xlane.f32.xlu0 %v2646_v56 }
 0xb67   :  { %2650 = vadd.xlane.f32.xlu1 %v2649_v36  ;;  %2678 = vadd.xlane.f32.xlu0 %v2677_v16 }
 0xb6b   :  { %2681 = vadd.xlane.f32.xlu1 %v2680_v12  ;;  %2684 = vadd.xlane.f32.xlu0 %v2683_v46 }
 0xb6f   :  { %2687 = vadd.xlane.f32.xlu1 %v2686_v60 }
 0xbe8   :  { %v2642_v22 = vpop.xlane.xlu0 %2641 }
 0xbe9   :  { %v2657_v17 = vmul.f32 0.03125, %v2642_v22 }
 0xbeb   :  { %v4815_v59 = vsub.f32 %v2624_v7, %v2657_v17  ;;  %v2747_v7 = vsub.s32 5, %v4925_v49 }
 0xbec   :  { %v2645_v53 = vpop.xlane.xlu1 %2644  ;;  %v2648_v42 = vpop.xlane.xlu0 %2647 }
 0xbed   :  { %v2658_v5 = vmul.f32 0.03125, %v2645_v53  ;;  %v2659_v43 = vmul.f32 0.03125, %v2648_v42  ;;  %v2673_v25 = vmul.f32 %v4815_v59, %v4815_v59  ;;  %v2748_v48 = vrot.slane %v4658_v23, %v2747_v7 }
 0xbef   :  { %v4819_v32 = vsub.f32 %v2625_v44, %v2658_v5  ;;  %v4821_v6 = vsub.f32 %v2626_v33, %v2659_v43  ;;  %v2689_v27 = vsel %vm128_vm0, %v2673_v25, 0.0 }
 0xbf0   :  { %v2651_v21 = vpop.xlane.xlu1 %2650  ;;  %2690 = vadd.xlane.f32.xlu0 %v2689_v27  ;;  %v2679_v58 = vpop.xlane.xlu0 %2678 }
 0xbf1   :  { %v2660_v45 = vmul.f32 0.03125, %v2651_v21  ;;  %v2701_v54 = vmul.f32 0.03125, %v2679_v58  ;;  %v2674_v9 = vmul.f32 %v4819_v32, %v4819_v32  ;;  %v2675_v41 = vmul.f32 %v4821_v6, %v4821_v6 }
 0xbf3   :  { %v4828_v2 = vsub.f32 %v2627_v34, %v2660_v45  ;;  %v2709_v37 = vadd.f32 1e-12, %v2701_v54  ;;  %v2692_v19 = vsel %vm128_vm0, %v2674_v9, 0.0  ;;  %v2695_v11 = vsel %vm128_vm0, %v2675_v41, 0.0 }
 0xbf4   :  { %2693 = vadd.xlane.f32.xlu1 %v2692_v19  ;;  %v2682_v47 = vpop.xlane.xlu1 %2681  ;;  %2696 = vadd.xlane.f32.xlu0 %v2695_v11  ;;  %v2685_v51 = vpop.xlane.xlu0 %2684 }
 0xbf5   :  { %3628 = vrsqrt.f32 %v2709_v37  ;;  %v2702_v24 = vmul.f32 0.03125, %v2682_v47  ;;  %v2703_v39 = vmul.f32 0.03125, %v2685_v51  ;;  %v2676_v31 = vmul.f32 %v4828_v2, %v4828_v2 }
 0xbf7   :  { %v2710_v20 = vadd.f32 1e-12, %v2702_v24  ;;  %v2711_v1 = vadd.f32 1e-12, %v2703_v39  ;;  %v2698_v4 = vsel %vm128_vm0, %v2676_v31, 0.0 }
 0xbf8   :  { %2699 = vadd.xlane.f32.xlu1 %v2698_v4  ;;  %v2688_v57 = vpop.xlane.xlu1 %2687 }
 0xbf9   :  { %3630 = vrsqrt.f32 %v2710_v20  ;;  %v2704_v13 = vmul.f32 0.03125, %v2688_v57 }
 0xbfa   :  { %3632 = vrsqrt.f32 %v2711_v1 }
 0xbfb   :  { %v2712_v8 = vadd.f32 1e-12, %v2704_v13 }
 0xbfd   :  { %3634 = vrsqrt.f32 %v2712_v8 }
 0xc02   :  { %v3629_v30 = vpop.eup %3628 }
 0xc03   :  { %v2725_v50 = vmul.f32 %v3629_v30, %v4777_v52 }
 0xc05   :  { %v2737_v0 = vmul.f32 %v2736_v55, %v2725_v50 }
 0xc06   :  { %v3631_v40 = vpop.eup %3630 }
 0xc07   :  { %v3633_v28 = vpop.eup %3632  ;;  %v2749_v33 = vadd.f32 %v2748_v48, %v2737_v0  ;;  %v2726_v61 = vmul.f32 %v3631_v40, %v4789_v18 }
 0xc08   :  { %v2727_v44 = vmul.f32 %v3633_v28, %v4794_v63 }
 0xc09   :  { %2757 = vst.msk [vmem:[%s4888_s9] sm:$0xff] %vm128_vm0, %v2749_v33  ;;  %v2738_v49 = vmul.f32 %v2736_v55, %v2726_v61 }
 0xc0a   :  { %v3635_v38 = vpop.eup %3634  ;;  %v2739_v14 = vmul.f32 %v2736_v55, %v2727_v44 }
 0xc0b   :  { %v2750_v62 = vadd.f32 %v2748_v48, %v2738_v49  ;;  %v2728_v23 = vmul.f32 %v3635_v38, %v4804_v15 }
 0xc0c   :  { %v2751_v52 = vadd.f32 %v2748_v48, %v2739_v14 }
 0xc0d   :  { %2758 = vst.msk [vmem:[%s4888_s9 + $0x8] sm:$0xff] %vm128_vm0, %v2750_v62  ;;  %v2740_v18 = vmul.f32 %v2736_v55, %v2728_v23 }
 0xc0e   :  { %2759 = vst.msk [vmem:[%s4888_s9 + $0x10] sm:$0xff] %vm128_vm0, %v2751_v52 }
 0xc0f   :  { %v2752_v63 = vadd.f32 %v2748_v48, %v2740_v18 }
 0xc11   :  { %2760 = vst.msk [vmem:[%s4888_s9 + $0x18] sm:$0xff] %vm128_vm0, %v2752_v63 }
 0xc79   :  { %v2691_v56 = vpop.xlane.xlu0 %2690 }
 0xc7a   :  { %v2705_v26 = vmul.f32 0.03125, %v2691_v56 }
 0xc7c   :  { %v2713_v34 = vadd.f32 1e-12, %v2705_v26 }
 0xc7d   :  { %v2694_v3 = vpop.xlane.xlu1 %2693  ;;  %v2697_v15 = vpop.xlane.xlu0 %2696 }
 0xc7e   :  { %3636 = vrsqrt.f32 %v2713_v34  ;;  %v2706_v36 = vmul.f32 0.03125, %v2694_v3  ;;  %v2707_v16 = vmul.f32 0.03125, %v2697_v15 }
 0xc80   :  { %v2714_v29 = vadd.f32 1e-12, %v2706_v36  ;;  %v2715_v12 = vadd.f32 1e-12, %v2707_v16 }
 0xc81   :  { %v2700_v46 = vpop.xlane.xlu1 %2699 }
 0xc82   :  { %3638 = vrsqrt.f32 %v2714_v29  ;;  %v2708_v35 = vmul.f32 0.03125, %v2700_v46 }
 0xc83   :  { %3640 = vrsqrt.f32 %v2715_v12 }
 0xc84   :  { %v2716_v60 = vadd.f32 1e-12, %v2708_v35 }
 0xc86   :  { %3642 = vrsqrt.f32 %v2716_v60 }
 0xc8b   :  { %v3637_v22 = vpop.eup %3636 }
 0xc8c   :  { %v2729_v17 = vmul.f32 %v3637_v22, %v4815_v59 }
 0xc8e   :  { %v2741_v53 = vmul.f32 %v2736_v55, %v2729_v17 }
 0xc8f   :  { %v3639_v42 = vpop.eup %3638 }
 0xc90   :  { %v3641_v5 = vpop.eup %3640  ;;  %v2753_v43 = vadd.f32 %v2748_v48, %v2741_v53  ;;  %v2730_v25 = vmul.f32 %v3639_v42, %v4819_v32 }
 0xc91   :  { %v2731_v27 = vmul.f32 %v3641_v5, %v4821_v6 }
 0xc92   :  { %2761 = vst.msk [vmem:[%s4888_s9 + $0x20] sm:$0xff] %vm128_vm0, %v2753_v43  ;;  %v2742_v21 = vmul.f32 %v2736_v55, %v2730_v25 }
 0xc93   :  { %v3643_v58 = vpop.eup %3642  ;;  %v2743_v45 = vmul.f32 %v2736_v55, %v2731_v27 }
 0xc94   :  { %v2754_v54 = vadd.f32 %v2748_v48, %v2742_v21  ;;  %v2732_v9 = vmul.f32 %v3643_v58, %v4828_v2 }
 0xc95   :  { %v2755_v59 = vadd.f32 %v2748_v48, %v2743_v45 }
 0xc96   :  { %2762 = vst.msk [vmem:[%s4888_s9 + $0x28] sm:$0xff] %vm128_vm0, %v2754_v54  ;;  %v2744_v32 = vmul.f32 %v2736_v55, %v2732_v9 }
 0xc97   :  { %2763 = vst.msk [vmem:[%s4888_s9 + $0x30] sm:$0xff] %vm128_vm0, %v2755_v59 }
 0xc98   :  { %v2756_v6 = vadd.f32 %v2748_v48, %v2744_v32 }
 0xc9a   :  { %2764 = vst.msk [vmem:[%s4888_s9 + $0x38] sm:$0xff] %vm128_vm0, %v2756_v6 }

</bundles_post_ra>
